<compile_context>
chip_gen: v5e
topology: v5e:2x2
jax: 0.10.0
libtpu: 0.0.40
codegen_flags: <defaults>
</compile_context>

<pallas_src>
import jax
import jax.numpy as jnp
from jax.experimental import pallas as pl
from jax.experimental.pallas import tpu as pltpu

HIDDEN_DIM = 128                 # module's hidden_dim
FEAT_DIM = 2 * HIDDEN_DIM        # D = 256, the Linear in/out width


def self_attention_kernel(x_ref, wqkv_ref, bqkv_ref, out_ref):
    # x_ref:    (Bt, S, D)  -- Bt batch elements per grid step
    # wqkv_ref: (D, 3D)     -- fused [Wq | Wk | Wv], VMEM-resident across the grid
    # bqkv_ref: (1, 3D)     -- fused [bq | bk | bv]
    # out_ref:  (Bt, D)     -- sublane/lane-dense pooled output rows
    Bt, S, D = x_ref.shape

    # Fused Q/K/V projection as a single lane-dense (Bt*S, D) @ (D, 3D) matmul.
    # (S is a multiple of 8, so folding (Bt, S) -> Bt*S is layout-preserving.)
    x2 = x_ref[...].reshape(Bt * S, D)
    qkv = jnp.dot(x2, wqkv_ref[...], preferred_element_type=jnp.float32)
    qkv = (qkv + bqkv_ref[...]).reshape(Bt, S, 3 * D)

    q = qkv[:, :, :D]                      # lane-aligned slices at 0 / 256 / 512
    k = qkv[:, :, D:2 * D]
    v = qkv[:, :, 2 * D:]

    # scores = Q @ K^T, batched over Bt; contraction on the feature axis.
    s = jnp.einsum('bqd,bkd->bqk', q, k, preferred_element_type=jnp.float32)

    # Stable softmax over the last axis; normalization via EUP reciprocal.
    m = jnp.max(s, axis=-1, keepdims=True)
    e = jnp.exp(s - m)
    denom = jnp.sum(e, axis=-1, keepdims=True)
    p = e * pl.reciprocal(denom, approx=True)

    attn = jnp.einsum('bqk,bkd->bqd', p, v, preferred_element_type=jnp.float32)

    # AdaptiveMaxPool1d(1) over the sequence axis -> (Bt, D), stored dense.
    out_ref[...] = jnp.max(attn, axis=1).astype(out_ref.dtype)


def self_attention_forward(x, wqkv, bqkv, *, block_b=8):
    """x: (B, S, D) f32; wqkv: (D, 3D); bqkv: (1, 3D). Returns (B, D) f32."""
    B, S, D = x.shape
    Bt = min(block_b, B)                       # batch tile (multiple of 8 when B allows)
    Bp = pl.cdiv(B, Bt) * Bt                   # pad batch to a whole number of tiles
    if Bp != B:
        x = jnp.pad(x, ((0, Bp - B), (0, 0), (0, 0)))

    out = pl.pallas_call(
        self_attention_kernel,
        out_shape=jax.ShapeDtypeStruct((Bp, D), jnp.float32),
        grid_spec=pltpu.PrefetchScalarGridSpec(
            num_scalar_prefetch=0,
            grid=(Bp // Bt,),
            in_specs=[
                pl.BlockSpec((Bt, S, D), lambda b: (b, 0, 0)),   # stream x tiles
                pl.BlockSpec((D, 3 * D), lambda b: (0, 0)),      # resident fused W
                pl.BlockSpec((1, 3 * D), lambda b: (0, 0)),      # resident fused b
            ],
            out_specs=pl.BlockSpec((Bt, D), lambda b: (b, 0)),   # dense (Bt, D) rows
        ),
        compiler_params=pltpu.CompilerParams(
            dimension_semantics=("parallel",)),  # batch tiles split across TCs (v7x)
    )(x, wqkv, bqkv)
    return out[:B]


def init_params(key, hidden_dim=HIDDEN_DIM):
    """Deterministic synthetic parameters matching nn.Linear(2H, 2H) x3.

    Torch stores Linear weights as (out, in); here each is pre-transposed to
    (in, out) and the three are concatenated along the output axis into a single
    fused (D, 3D) weight + (1, 3D) bias (order: Q, K, V).
    """
    D = 2 * hidden_dim
    keys = jax.random.split(key, 6)
    scale = 1.0 / jnp.sqrt(D)
    wq = scale * jax.random.normal(keys[0], (D, D), dtype=jnp.float32)
    wk = scale * jax.random.normal(keys[1], (D, D), dtype=jnp.float32)
    wv = scale * jax.random.normal(keys[2], (D, D), dtype=jnp.float32)
    bq = scale * jax.random.normal(keys[3], (1, D), dtype=jnp.float32)
    bk = scale * jax.random.normal(keys[4], (1, D), dtype=jnp.float32)
    bv = scale * jax.random.normal(keys[5], (1, D), dtype=jnp.float32)
    wqkv = jnp.concatenate([wq, wk, wv], axis=1)    # (D, 3D) = (256, 768)
    bqkv = jnp.concatenate([bq, bk, bv], axis=1)    # (1, 3D)
    return wqkv, bqkv


def self_attention_ref(x, wqkv, bqkv):
    """Pure-JAX reference of the PyTorch forward (high-precision matmuls)."""
    D = x.shape[-1]
    hp = jax.lax.Precision.HIGHEST
    qkv = jnp.einsum('bsd,de->bse', x, wqkv, precision=hp) + bqkv[0]
    q, k, v = qkv[..., :D], qkv[..., D:2 * D], qkv[..., 2 * D:]
    s = jnp.einsum('bqd,bkd->bqk', q, k, precision=hp)
    p = jax.nn.softmax(s, axis=-1)
    attn = jnp.einsum('bqk,bkd->bqd', p, v, precision=hp)
    return jnp.max(attn, axis=1)


if __name__ == "__main__":
    B, S = 16, 8                     # small shapes; two batch tiles of 8 -> grid of 2
    D = FEAT_DIM                     # 256, as implied by hidden_dim = 128

    key = jax.random.PRNGKey(0)
    k_x, k_p = jax.random.split(key)
    x = jax.random.normal(k_x, (B, S, D), dtype=jnp.float32)
    wqkv, bqkv = init_params(k_p)

    out = self_attention_forward(x, wqkv, bqkv)
    jax.block_until_ready(out)

    assert out.shape == (B, D)
    assert bool(jnp.isfinite(out).all())

    # Sanity check against the pure-JAX reference (generous tolerance: the kernel
    # uses the EUP approximate reciprocal in the softmax normalization).
    ref = self_attention_ref(x, wqkv, bqkv)
    max_diff = float(jnp.max(jnp.abs(out - ref)))
    assert max_diff < 0.25, f"kernel/reference mismatch: max|diff|={max_diff}"
    print("KERNEL_OK")
</pallas_src>

<mosaic_0001>
module attributes {stable_mosaic.version = 11 : i64} {
  func.func @self_attention_kernel(%arg0: i32, %arg1: memref<8x8x256xf32, #tpu.memory_space<vmem>>, %arg2: memref<256x768xf32, #tpu.memory_space<vmem>>, %arg3: memref<1x768xf32, #tpu.memory_space<vmem>>, %arg4: memref<8x256xf32, #tpu.memory_space<vmem>>) attributes {dimension_semantics = [#tpu.dimension_semantics<parallel>], iteration_bounds = array<i64: 2>, scalar_prefetch = 0 : i64, scratch_operands = 0 : i64, tpu.core_type = #tpu.core_type<tc>, window_params = [{transform_indices = @transform_0, window_bounds = array<i64: 8, 8, 256>}, {pipeline_mode = #tpu.pipeline_mode<synchronous>, transform_indices = @transform_1, window_bounds = array<i64: 256, 768>}, {pipeline_mode = #tpu.pipeline_mode<synchronous>, transform_indices = @transform_2, window_bounds = array<i64: 1, 768>}, {transform_indices = @transform_3, window_bounds = array<i64: 8, 256>}]} {
    %c0 = arith.constant 0 : index
    %c0_0 = arith.constant 0 : index
    %c0_1 = arith.constant 0 : index
    %0 = vector.load %arg1[%c0, %c0_0, %c0_1] : memref<8x8x256xf32, #tpu.memory_space<vmem>>, vector<8x8x256xf32>
    %1 = vector.shape_cast %0 : vector<8x8x256xf32> to vector<64x256xf32>
    %c0_2 = arith.constant 0 : index
    %c0_3 = arith.constant 0 : index
    %2 = vector.load %arg2[%c0_2, %c0_3] : memref<256x768xf32, #tpu.memory_space<vmem>>, vector<256x768xf32>
    %cst = arith.constant dense<0.000000e+00> : vector<64x768xf32>
    %3 = tpu.matmul %1, %2, %cst {dimension_numbers = #tpu.dot_dimension_numbers<[1], [0], [0], [1], [0, 0, 1, 1], [], []>} : vector<64x256xf32>, vector<256x768xf32>, vector<64x768xf32> -> vector<64x768xf32>
    %c0_4 = arith.constant 0 : index
    %c0_5 = arith.constant 0 : index
    %4 = vector.load %arg3[%c0_4, %c0_5] : memref<1x768xf32, #tpu.memory_space<vmem>>, vector<1x768xf32>
    %5 = vector.broadcast %4 : vector<1x768xf32> to vector<64x768xf32>
    %6 = arith.addf %3, %5 : vector<64x768xf32>
    %7 = vector.shape_cast %6 : vector<64x768xf32> to vector<8x8x768xf32>
    %8 = vector.extract_strided_slice %7 {offsets = [0, 0, 0], sizes = [8, 8, 256], strides = [1, 1, 1]} : vector<8x8x768xf32> to vector<8x8x256xf32>
    %9 = vector.extract_strided_slice %7 {offsets = [0, 0, 256], sizes = [8, 8, 256], strides = [1, 1, 1]} : vector<8x8x768xf32> to vector<8x8x256xf32>
    %10 = vector.extract_strided_slice %7 {offsets = [0, 0, 512], sizes = [8, 8, 256], strides = [1, 1, 1]} : vector<8x8x768xf32> to vector<8x8x256xf32>
    "tpu.trace_start"() <{level = 10 : i32, message = "bqd,bkd->bqk"}> : () -> ()
    %cst_6 = arith.constant dense<0.000000e+00> : vector<8x8x8xf32>
    %11 = tpu.matmul %8, %9, %cst_6 {dimension_numbers = #tpu.dot_dimension_numbers<[2], [2], [1], [1], [0, 0, 0, 1, 1, 1], [0], [0]>} : vector<8x8x256xf32>, vector<8x8x256xf32>, vector<8x8x8xf32> -> vector<8x8x8xf32>
    "tpu.trace_stop"() : () -> ()
    %cst_7 = arith.constant dense<0xFF800000> : vector<8x8xf32>
    %12 = vector.multi_reduction <maximumf>, %11, %cst_7 [2] : vector<8x8x8xf32> to vector<8x8xf32>
    %13 = vector.shape_cast %12 : vector<8x8xf32> to vector<8x8x1xf32>
    %14 = vector.broadcast %13 : vector<8x8x1xf32> to vector<8x8x8xf32>
    %15 = arith.subf %11, %14 : vector<8x8x8xf32>
    %16 = math.exp %15 : vector<8x8x8xf32>
    %cst_8 = arith.constant dense<0.000000e+00> : vector<8x8xf32>
    %17 = vector.multi_reduction <add>, %16, %cst_8 [2] : vector<8x8x8xf32> to vector<8x8xf32>
    %18 = vector.shape_cast %17 : vector<8x8xf32> to vector<8x8x1xf32>
    %19 = tpu.reciprocal %18 {approx = true} : vector<8x8x1xf32> -> vector<8x8x1xf32>
    %20 = vector.broadcast %19 : vector<8x8x1xf32> to vector<8x8x8xf32>
    %21 = arith.mulf %16, %20 : vector<8x8x8xf32>
    "tpu.trace_start"() <{level = 10 : i32, message = "bqk,bkd->bqd"}> : () -> ()
    %cst_9 = arith.constant dense<0.000000e+00> : vector<8x8x256xf32>
    %22 = tpu.matmul %21, %10, %cst_9 {dimension_numbers = #tpu.dot_dimension_numbers<[2], [1], [1], [2], [0, 0, 0, 1, 1, 2], [0], [0]>} : vector<8x8x8xf32>, vector<8x8x256xf32>, vector<8x8x256xf32> -> vector<8x8x256xf32>
    "tpu.trace_stop"() : () -> ()
    %cst_10 = arith.constant dense<0xFF800000> : vector<8x256xf32>
    %23 = vector.multi_reduction <maximumf>, %22, %cst_10 [1] : vector<8x8x256xf32> to vector<8x256xf32>
    %c0_11 = arith.constant 0 : index
    %c0_12 = arith.constant 0 : index
    %24 = vector.load %arg4[%c0_11, %c0_12] : memref<8x256xf32, #tpu.memory_space<vmem>>, vector<8x256xf32>
    tpu.vector_store %arg4[%c0_11, %c0_12], %23 {strides = array<i32>} : memref<8x256xf32, #tpu.memory_space<vmem>>, vector<8x256xf32>,
    return
  }
  func.func @transform_0(%arg0: i32) -> (i32, i32, i32) {
    %c0_i32 = arith.constant 0 : i32
    %c0_i32_0 = arith.constant 0 : i32
    %c0_i32_1 = arith.constant 0 : i32
    return %arg0, %c0_i32, %c0_i32_0 : i32, i32, i32
  }
  func.func @transform_1(%arg0: i32) -> (i32, i32) {
    %c0_i32 = arith.constant 0 : i32
    %c0_i32_0 = arith.constant 0 : i32
    %c0_i32_1 = arith.constant 0 : i32
    return %c0_i32, %c0_i32_0 : i32, i32
  }
  func.func @transform_2(%arg0: i32) -> (i32, i32) {
    %c0_i32 = arith.constant 0 : i32
    %c0_i32_0 = arith.constant 0 : i32
    %c0_i32_1 = arith.constant 0 : i32
    return %c0_i32, %c0_i32_0 : i32, i32
  }
  func.func @transform_3(%arg0: i32) -> (i32, i32) {
    %c0_i32 = arith.constant 0 : i32
    %c0_i32_0 = arith.constant 0 : i32
    return %arg0, %c0_i32 : i32, i32
  }
}

</mosaic_0001>

<bundles_post_ra>
// kernel: tpu_custom_call.1
= control target key start
LH: loop header
LB: loop body
LE: loop exit
PB: predicated region body
PF: predicated region fallthrough
CT: control target
= control target key end

     0   :  { %8 = vsyncpa [#allocation3], 0  ;;  %s2783_s0 = inlined_call_operand.hbm [shape: f32[16,8,256], index: 0, kind: input, shape index: {}]   ;;  %s2784_s1 = inlined_call_operand.hbm [shape: f32[256,768], index: 1, kind: input, shape index: {}]   ;;  %s2785_s2 = inlined_call_operand.hbm [shape: f32[1,768], index: 2, kind: input, shape index: {}]   ;;  %s2786_s3 = inlined_call_operand.hbm [shape: f32[16,256], index: 3, kind: output, shape index: {}]  }
   0x1   :  { %10 = vsyncpa [#allocation3 + $0x1], 0 }
   0x2   :  { %11 = vsyncpa [#allocation6], 0 }
   0x3   :  { %12 = vsyncpa [#allocation4], 0 }
   0x4   :  { %14 = vsyncpa [#allocation4 + $0x1], 0  ;;  %s2263_s12 = smov 0   ;;  %s2265_s13 = smov 0  }
   0x5   :  { %s2267_s14 = smov 0   ;;  %s2269_s15 = smov 0  }
   0x6 LB: > { %s2284_s16 = sadd.s32 4294967295, %s2235_s15   ;;  %s1934_s17 = sadd.s32 4294967294, %s2235_s15   ;;  %s2235_s15 = sphi %s2269_s15, %s2796_s15   ;;  %s2231_s14 = sphi %s2267_s14, %s2795_s14   ;;  %s2227_s13 = sphi %s2265_s13, %s2794_s13   ;;  %s2223_s12 = sphi %s2263_s12, %s2793_s12  }
   0x7   : > { %p40_p0 = scmp.ne.s32.totalorder %s2227_s13, %s2223_s12  ;;  %p41_p1 = scmp.eq.s32.totalorder %s2284_s16, 0 }
   0x8   : > { %p106_p2 = scmp.eq.s32.totalorder %s2284_s16, 1  ;;  %p112_p3 = scmp.eq.s32.totalorder %s1934_s17, 1 }
   0x9   : > { %p2293_p4 = por %p41_p1, %p40_p0  ;;  %p1935_p5 = scmp.ge.s32.totalorder %s2235_s15, 1 }
   0xa   : > { %p2298_p6 = por %p112_p3, %p40_p0  ;;  %p119_p7 = scmp.lt.s32.totalorder %s2235_s15, 3 }
   0xb   : > { %s130_s22 = sshll.u32 %s2784_s1, 4  ;;  %s2237_s24 = smov [#allocation5]   ;;  %s131_s22 = int_to_ptr.hbm [resolvable:$true] %s130_s22 }
   0xc   : > { %p2306_p8 = pnand %p1935_p5, %p119_p7  ;;  %s132_s25 = sshll.u32 %s2237_s24, 4  ;;  %s133_s25 = int_to_ptr.vmem [resolvable:$true] %s132_s25 }
   0xd   : > { %s145_s28 = sshll.u32 %s2785_s2, 4  ;;  %s2238_s29 = smov 768   ;;  %s146_s28 = int_to_ptr.hbm [resolvable:$true] %s145_s28 }
   0xe   : > { %p1984_p9 = pneg %p2306_p8  ;;  %s2239_s30 = smov 48  }
   0xf   : > { %s2240_s4 = smov [#allocation7]   ;;  %s2319_s6 = sadd.s32 1, %s2235_s15  }
  0x10   : > { %p1985_p10 = pnand %p1984_p9, %p41_p1  ;;  %s147_s5 = sshll.u32 %s2240_s4, 4  ;;  %s148_s5 = int_to_ptr.vmem [resolvable:$true] %s147_s5 }
  0x11   : > { %s27_s7 = sadd.s32 1, %s2231_s14  ;;  %s24_s8 = ssub.s32 %s2235_s15, %s2319_s6 }
  0x12   : > { %1987 = dma.hbm_to_vmem [thread:$0]  (!%p1985_p10), %s131_s22, 24576, %s133_s25, [#allocation6], %s2238_s29, %s2238_s29, %s2239_s30  }
  0x13   : > { %1990 = dma.hbm_to_vmem [thread:$0]  (!%p1985_p10), %s146_s28, 96, %s148_s5, [#allocation6]  }
  0x14   : > { %p34_p12 = scmp.ne.s32.totalorder %s2231_s14, %s2227_s13  ;;  %p25_p13 = scmp.eq.s32.totalorder %s24_s8, 0 }
  0x15   : > { %p35_p0 = scmp.eq.s32.totalorder %s2235_s15, 0  ;;  %p2001_p5 = scmp.lt.s32.totalorder %s2235_s15, 2 }
  0x16   : > { %p2329_p3 = por %p106_p2, %p34_p12  ;;  %s158_s11 = sand.u32 1, %s2231_s14  }
  0x17   : > { %s2335_s10 = scalar_select %p25_p13, %s2231_s14, %s27_s7  }
  0x18   : > { %p36_p7 = por %p35_p0, %p34_p12  ;;  %s1939_s17 = sshll.u32 %s158_s11, 7 }
  0x19   : > { %s1970_s20 = sshll.u32 %s2235_s15, 7  ;;  %s162_s25 = scalar_lea.vmem [#allocation2], %s1939_s17 }
  0x1a   : > { %s168_s24 = scalar_lea.hbm %s2783_s0, %s1970_s20  ;;  %s171_s26 = sshll.u32 %s162_s25, 4  ;;  %s172_s26 = int_to_ptr.vmem [resolvable:$true] %s171_s26 }
  0x1b   : > { %s169_s27 = sshll.u32 %s168_s24, 4  ;;  %p2342_p2 = pnand %p2001_p5, %p36_p7  ;;  %s170_s27 = int_to_ptr.hbm [resolvable:$true] %s169_s27 }
  0x1c   : > { %s159_s29 = scalar_lea.sflag [#allocation3], %s158_s11  ;;  %s2135_s30 = sshra.s32 %s170_s27, 4  ;;  %s2136_s30 = int_to_ptr.hbm [resolvable:$true] %s2135_s30 }
  0x1d   : > { %s2137_s4 = scalar_lea.hbm %s2136_s30, 128  ;;  %p2139_p10 = pneg %p2342_p2 }
  0x1e   : > { %p2138_p9 = scmp.ne.s32.totalorder %s2136_s30, %s2137_s4  ;;  %s2142_s8 = scalar_lea.hbm %s2783_s0, 256 }
  0x1f   : > { %p2143_p0 = scmp.lt.s32.totalorder %s2136_s30, %s2783_s0  ;;  %p2144_p5 = scmp.lt.s32.totalorder %s2142_s8, %s2137_s4 }
  0x20   : > { %p2140_p12 = pnand %p2139_p10, %p2138_p9 }
  0x21   : > { %p2145_p7 = por %p2144_p5, %p2143_p0 }
  0x22   : > { %p2141_p13 = pneg %p2140_p12 }
  0x24   : > { %p2146_p11 = pnand %p2145_p7, %p2141_p13 }
  0x26   : > { %2149 = shalt.err (!%p2146_p11)
}
  0x27   : > { %s2241_s11 = smov 256   ;;  %s2242_s21 = smov 16  }
  0x28   : > { %1994 = dma.hbm_to_vmem [thread:$0]  (!%p2342_p2), %s170_s27, 2048, %s172_s26, %s159_s29, %s2241_s11, %s2241_s11, %s2242_s21  }
  0x29   : > { %183 = sbr.rel (%p2306_p8) target bundleno = 879 (0x36f), region = 32  ;;  %s2359_s22 = sand.u32 (!%p2306_p8), 1, %s2227_s13  }
  0x2a   : > { %s1944_s24 = sshll.u32 (!%p2306_p8), %s2359_s22, 7  ;;  %s186_s25 = scalar_lea.sflag (!%p2306_p8), [#allocation3], %s2359_s22 }
  0x2b   : > { %s2363_s30 = scalar_lea.vmem (!%p2306_p8), [#allocation2], %s1944_s24 }
  0x2e   : > { %2210 = dma.done.wait (%p2293_p4), %s186_s25, 2048  }
  0x2f   : > { %2212 = vsyncadd (%p2293_p4), %s186_s25, 4294965248 }
  0x30   : > { %2214 = dma.done.wait (%p41_p1), [#allocation6], 24672  }
  0x31   : > { %2216 = vsyncadd (%p41_p1), [#allocation6], 4294942624  ;;  %v330_v0 = vld [vmem:[#allocation5 + $0x2d0] sm:$0xff]  ;;  %v331_v1 = vld [vmem:[#allocation5 + $0x2d8] sm:$0xff]  ;;  %vm1258_vm0 = vcmask 64512   ;;  %vm1803_vm1 = vcmask 1041409  }
  0x32   : > { %v324_v2 = vld [vmem:[#allocation5 + $0x2a0] sm:$0xff]  ;;  %446 = vmatpush.msra.mxu0 %v330_v0  ;;  %528 = vmatpush.msra.mxu2 %v331_v1  ;;  %v426_v3 = vld [vmem:[#allocation5 + $0x5d0] sm:$0xff]  ;;  %v325_v4 = vld [vmem:[#allocation5 + $0x2a8] sm:$0xff]  ;;  %vm1805_vm2 = vcmask 1042434   ;;  %vm1807_vm3 = vcmask 1043459   ;;  %vm1809_vm4 = vcmask 1044484  }
  0x33   : > { %v427_v5 = vld [vmem:[#allocation5 + $0x5d8] sm:$0xff]  ;;  %487 = vmatpush.msra.mxu1 %v426_v3  ;;  %v318_v6 = vld [vmem:[#allocation5 + $0x270] sm:$0xff]  ;;  %v420_v7 = vld [vmem:[#allocation5 + $0x5a0] sm:$0xff]  ;;  %s1947_s18 = sshll.u32 %s2359_s22, 4  ;;  %s1971_s23 = sshll.u32 %s2284_s16, 4  ;;  %vm1811_vm5 = vcmask 1045509  }
  0x34   : > { %569 = vmatpush.msra.mxu3 %v427_v5  ;;  %v319_v8 = vld [vmem:[#allocation5 + $0x278] sm:$0xff]  ;;  %447 = vmatpush.msra.mxu0 %v324_v2  ;;  %v421_v9 = vld [vmem:[#allocation5 + $0x5a8] sm:$0xff]  ;;  %v414_v10 = vld [vmem:[#allocation5 + $0x570] sm:$0xff]  ;;  %vm1813_vm6 = vcmask 1046534   ;;  %s1840_s28 = scalar_lea.hbm %s2786_s3, %s1971_s23  ;;  %vm1815_vm7 = vcmask 1047559   ;;  %s222_s16 = scalar_lea.vmem [#allocation8], %s1947_s18 }
  0x35   : > { %529 = vmatpush.msra.mxu2 %v325_v4  ;;  %488 = vmatpush.msra.mxu1 %v420_v7  ;;  %v312_v11 = vld [vmem:[#allocation5 + $0x240] sm:$0xff]  ;;  %v313_v12 = vld [vmem:[#allocation5 + $0x248] sm:$0xff]  ;;  %v415_v13 = vld [vmem:[#allocation5 + $0x578] sm:$0xff]  ;;  %s1842_s29 = sshll.u32 %s222_s16, 4  ;;  %s1844_s4 = sshll.u32 %s1840_s28, 4  ;;  %s1843_s29 = int_to_ptr.vmem [resolvable:$true] %s1842_s29  ;;  %s1845_s4 = int_to_ptr.hbm [resolvable:$true] %s1844_s4 }
  0x36   : > { %570 = vmatpush.msra.mxu3 %v421_v9  ;;  %448 = vmatpush.msra.mxu0 %v318_v6  ;;  %v408_v14 = vld [vmem:[#allocation5 + $0x540] sm:$0xff]  ;;  %v409_v15 = vld [vmem:[#allocation5 + $0x548] sm:$0xff]  ;;  %v306_v16 = vld [vmem:[#allocation5 + $0x210] sm:$0xff]  ;;  %s1829_s5 = scalar_lea.sflag [#allocation4], %s2359_s22  ;;  %s2179_s7 = sshra.s32 %s1845_s4, 4  ;;  %s2180_s7 = int_to_ptr.hbm [resolvable:$true] %s2179_s7 }
  0x37   : > { %530 = vmatpush.msra.mxu2 %v319_v8  ;;  %489 = vmatpush.msra.mxu1 %v414_v10  ;;  %v307_v17 = vld [vmem:[#allocation5 + $0x218] sm:$0xff]  ;;  %v402_v18 = vld [vmem:[#allocation5 + $0x510] sm:$0xff]  ;;  %v300_v20 = vld [vmem:[#allocation5 + $0x1e0] sm:$0xff]  ;;  %s2181_s8 = scalar_lea.hbm %s2180_s7, 16  ;;  %s2185_s11 = scalar_lea.hbm %s2786_s3, 32 }
  0x38   : > { %571 = vmatpush.msra.mxu3 %v415_v13  ;;  %449 = vmatpush.msra.mxu0 %v312_v11  ;;  %v403_v19 = vld [vmem:[#allocation5 + $0x518] sm:$0xff]  ;;  %v301_v21 = vld [vmem:[#allocation5 + $0x1e8] sm:$0xff]  ;;  %v396_v22 = vld [vmem:[#allocation5 + $0x4e0] sm:$0xff]  ;;  %p2182_p1 = scmp.ne.s32.totalorder %s2180_s7, %s2181_s8  ;;  %p2186_p11 = scmp.lt.s32.totalorder %s2180_s7, %s2786_s3 }
  0x39   : > { %531 = vmatpush.msra.mxu2 %v313_v12  ;;  %490 = vmatpush.msra.mxu1 %v408_v14  ;;  %v397_v23 = vld [vmem:[#allocation5 + $0x4e8] sm:$0xff]  ;;  %v294_v24 = vld [vmem:[#allocation5 + $0x1b0] sm:$0xff]  ;;  %v295_v25 = vld [vmem:[#allocation5 + $0x1b8] sm:$0xff]  ;;  %p2187_p2 = scmp.lt.s32.totalorder %s2185_s11, %s2181_s8 }
  0x3a   : > { %572 = vmatpush.msra.mxu3 %v409_v15  ;;  %450 = vmatpush.msra.mxu0 %v306_v16  ;;  %v390_v26 = vld [vmem:[#allocation5 + $0x4b0] sm:$0xff]  ;;  %v391_v27 = vld [vmem:[#allocation5 + $0x4b8] sm:$0xff]  ;;  %v288_v28 = vld [vmem:[#allocation5 + $0x180] sm:$0xff]  ;;  %p2183_p4 = pnand %p2182_p1, %p2329_p3 }
  0x3b   : > { %532 = vmatpush.msra.mxu2 %v307_v17  ;;  %491 = vmatpush.msra.mxu1 %v402_v18  ;;  %v289_v29 = vld [vmem:[#allocation5 + $0x188] sm:$0xff]  ;;  %v384_v30 = vld [vmem:[#allocation5 + $0x480] sm:$0xff]  ;;  %v282_v32 = vld [vmem:[#allocation5 + $0x150] sm:$0xff]  ;;  %p2188_p9 = por %p2187_p2, %p2186_p11 }
  0x3c   : > { %573 = vmatpush.msra.mxu3 %v403_v19  ;;  %451 = vmatpush.msra.mxu0 %v300_v20  ;;  %v385_v31 = vld [vmem:[#allocation5 + $0x488] sm:$0xff]  ;;  %v283_v33 = vld [vmem:[#allocation5 + $0x158] sm:$0xff]  ;;  %v378_v34 = vld [vmem:[#allocation5 + $0x450] sm:$0xff]  ;;  %p2184_p8 = pneg %p2183_p4 }
  0x3d   : > { %533 = vmatpush.msra.mxu2 %v301_v21  ;;  %492 = vmatpush.msra.mxu1 %v396_v22  ;;  %v379_v35 = vld [vmem:[#allocation5 + $0x458] sm:$0xff]  ;;  %v276_v36 = vld [vmem:[#allocation5 + $0x120] sm:$0xff]  ;;  %v277_v37 = vld [vmem:[#allocation5 + $0x128] sm:$0xff] }
  0x3e   : > { %574 = vmatpush.msra.mxu3 %v397_v23  ;;  %452 = vmatpush.msra.mxu0 %v294_v24  ;;  %v372_v38 = vld [vmem:[#allocation5 + $0x420] sm:$0xff]  ;;  %v373_v39 = vld [vmem:[#allocation5 + $0x428] sm:$0xff]  ;;  %v270_v40 = vld [vmem:[#allocation5 + $0xf0] sm:$0xff]  ;;  %p2189_p10 = pnand %p2188_p9, %p2184_p8 }
  0x3f   : > { %534 = vmatpush.msra.mxu2 %v295_v25  ;;  %493 = vmatpush.msra.mxu1 %v390_v26  ;;  %v271_v41 = vld [vmem:[#allocation5 + $0xf8] sm:$0xff]  ;;  %v366_v42 = vld [vmem:[#allocation5 + $0x3f0] sm:$0xff]  ;;  %v264_v44 = vld [vmem:[#allocation5 + $0xc0] sm:$0xff] }
  0x40   : > { %575 = vmatpush.msra.mxu3 %v391_v27  ;;  %453 = vmatpush.msra.mxu0 %v288_v28  ;;  %v367_v43 = vld [vmem:[#allocation5 + $0x3f8] sm:$0xff]  ;;  %v265_v45 = vld [vmem:[#allocation5 + $0xc8] sm:$0xff]  ;;  %v360_v46 = vld [vmem:[#allocation5 + $0x3c0] sm:$0xff] }
  0x41   : > { %535 = vmatpush.msra.mxu2 %v289_v29  ;;  %494 = vmatpush.msra.mxu1 %v384_v30  ;;  %v361_v47 = vld [vmem:[#allocation5 + $0x3c8] sm:$0xff]  ;;  %v258_v48 = vld [vmem:[#allocation5 + $0x90] sm:$0xff]  ;;  %v259_v49 = vld [vmem:[#allocation5 + $0x98] sm:$0xff] }
  0x42   : > { %576 = vmatpush.msra.mxu3 %v385_v31  ;;  %454 = vmatpush.msra.mxu0 %v282_v32  ;;  %v354_v50 = vld [vmem:[#allocation5 + $0x390] sm:$0xff]  ;;  %v355_v51 = vld [vmem:[#allocation5 + $0x398] sm:$0xff]  ;;  %v252_v52 = vld [vmem:[#allocation5 + $0x60] sm:$0xff] }
  0x43   : > { %536 = vmatpush.msra.mxu2 %v283_v33  ;;  %495 = vmatpush.msra.mxu1 %v378_v34  ;;  %v253_v53 = vld [vmem:[#allocation5 + $0x68] sm:$0xff]  ;;  %v348_v54 = vld [vmem:[#allocation5 + $0x360] sm:$0xff]  ;;  %v246_v56 = vld [vmem:[#allocation5 + $0x30] sm:$0xff] }
  0x44   : > { %577 = vmatpush.msra.mxu3 %v379_v35  ;;  %455 = vmatpush.msra.mxu0 %v276_v36  ;;  %v349_v55 = vld [vmem:[#allocation5 + $0x368] sm:$0xff]  ;;  %v247_v57 = vld [vmem:[#allocation5 + $0x38] sm:$0xff]  ;;  %v342_v58 = vld [vmem:[#allocation5 + $0x330] sm:$0xff] }
  0x45   : > { %537 = vmatpush.msra.mxu2 %v277_v37  ;;  %496 = vmatpush.msra.mxu1 %v372_v38  ;;  %v343_v59 = vld [vmem:[#allocation5 + $0x338] sm:$0xff]  ;;  %v240_v60 = vld [vmem:[#allocation5] sm:$0xff]  ;;  %v241_v61 = vld [vmem:[#allocation5 + $0x8] sm:$0xff] }
  0x46   : > { %578 = vmatpush.msra.mxu3 %v373_v39  ;;  %456 = vmatpush.msra.mxu0 %v270_v40  ;;  %v2374_v62 = vld [vmem:[%s2363_s30] sm:$0xff]  ;;  %v337_v0 = vld [vmem:[#allocation5 + $0x308] sm:$0xff]  ;;  %v326_v4 = vld [vmem:[#allocation5 + $0x2b0] sm:$0xff] }
  0x47   : > { %538 = vmatpush.msra.mxu2 %v271_v41  ;;  %497 = vmatpush.msra.mxu1 %v366_v42  ;;  %v336_v63 = vld [vmem:[#allocation5 + $0x300] sm:$0xff]  ;;  %v2377_v1 = vld [vmem:[%s2363_s30 + $0x8] sm:$0xff]  ;;  %v327_v6 = vld [vmem:[#allocation5 + $0x2b8] sm:$0xff] }
  0x48   : > { %579 = vmatpush.msra.mxu3 %v367_v43  ;;  %457 = vmatpush.msra.mxu0 %v264_v44  ;;  %v332_v2 = vld [vmem:[#allocation5 + $0x2e0] sm:$0xff]  ;;  %v333_v3 = vld [vmem:[#allocation5 + $0x2e8] sm:$0xff]  ;;  %v422_v8 = vld [vmem:[#allocation5 + $0x5b0] sm:$0xff] }
  0x49   : > { %539 = vmatpush.msra.mxu2 %v265_v45  ;;  %498 = vmatpush.msra.mxu1 %v360_v46  ;;  %v428_v5 = vld [vmem:[#allocation5 + $0x5e0] sm:$0xff]  ;;  %v429_v7 = vld [vmem:[#allocation5 + $0x5e8] sm:$0xff]  ;;  %v423_v11 = vld [vmem:[#allocation5 + $0x5b8] sm:$0xff] }
  0x4a   : > { %580 = vmatpush.msra.mxu3 %v361_v47  ;;  %458 = vmatpush.msra.mxu0 %v258_v48  ;;  %v320_v9 = vld [vmem:[#allocation5 + $0x280] sm:$0xff]  ;;  %v321_v10 = vld [vmem:[#allocation5 + $0x288] sm:$0xff]  ;;  %v2384_v12 = vld [vmem:[%s2363_s30 + $0x10] sm:$0xff] }
  0x4b   : > { %540 = vmatpush.msra.mxu2 %v259_v49  ;;  %499 = vmatpush.msra.mxu1 %v354_v50  ;;  %v314_v13 = vld [vmem:[#allocation5 + $0x250] sm:$0xff]  ;;  %v416_v14 = vld [vmem:[#allocation5 + $0x580] sm:$0xff]  ;;  %v2387_v15 = vld [vmem:[%s2363_s30 + $0x18] sm:$0xff] }
  0x4c   : > { %581 = vmatpush.msra.mxu3 %v355_v51  ;;  %459 = vmatpush.msra.mxu0 %v252_v52  ;;  %v315_v16 = vld [vmem:[#allocation5 + $0x258] sm:$0xff]  ;;  %v417_v17 = vld [vmem:[#allocation5 + $0x588] sm:$0xff]  ;;  %v308_v18 = vld [vmem:[#allocation5 + $0x220] sm:$0xff] }
  0x4d   : > { %541 = vmatpush.msra.mxu2 %v253_v53  ;;  %500 = vmatpush.msra.mxu1 %v348_v54  ;;  %v410_v19 = vld [vmem:[#allocation5 + $0x550] sm:$0xff]  ;;  %v309_v20 = vld [vmem:[#allocation5 + $0x228] sm:$0xff]  ;;  %v411_v21 = vld [vmem:[#allocation5 + $0x558] sm:$0xff] }
  0x4e   : > { %582 = vmatpush.msra.mxu3 %v349_v55  ;;  %460 = vmatpush.msra.mxu0 %v246_v56  ;;  %v302_v22 = vld [vmem:[#allocation5 + $0x1f0] sm:$0xff]  ;;  %v404_v23 = vld [vmem:[#allocation5 + $0x520] sm:$0xff]  ;;  %v303_v24 = vld [vmem:[#allocation5 + $0x1f8] sm:$0xff] }
  0x4f   : > { %542 = vmatpush.msra.mxu2 %v247_v57  ;;  %501 = vmatpush.msra.mxu1 %v342_v58  ;;  %v405_v25 = vld [vmem:[#allocation5 + $0x528] sm:$0xff]  ;;  %v2394_v26 = vld [vmem:[%s2363_s30 + $0x20] sm:$0xff]  ;;  %v398_v28 = vld [vmem:[#allocation5 + $0x4f0] sm:$0xff] }
  0x50   : > { %583 = vmatpush.msra.mxu3 %v343_v59  ;;  %461 = vmatpush.msra.mxu0 %v240_v60  ;;  %v296_v27 = vld [vmem:[#allocation5 + $0x1c0] sm:$0xff]  ;;  %v2397_v29 = vld [vmem:[%s2363_s30 + $0x28] sm:$0xff]  ;;  %v399_v31 = vld [vmem:[#allocation5 + $0x4f8] sm:$0xff] }
  0x51   : > { %543 = vmatpush.msra.mxu2 %v241_v61  ;;  %462 = vmatmul.f32.vlgmr.msra.gmra.mxu0 %v2374_v62  ;;  %v297_v30 = vld [vmem:[#allocation5 + $0x1c8] sm:$0xff]  ;;  %v290_v32 = vld [vmem:[#allocation5 + $0x190] sm:$0xff]  ;;  %v392_v33 = vld [vmem:[#allocation5 + $0x4c0] sm:$0xff] }
  0x52   : > { %544 = vmatmul.f32.vlgmr.msra.gmra.mxu2 %v2374_v62  ;;  %502 = vmatpush.msra.mxu1 %v336_v63  ;;  %v291_v34 = vld [vmem:[#allocation5 + $0x198] sm:$0xff]  ;;  %v393_v35 = vld [vmem:[#allocation5 + $0x4c8] sm:$0xff]  ;;  %v284_v36 = vld [vmem:[#allocation5 + $0x160] sm:$0xff] }
  0x53   : > { %584 = vmatpush.msra.mxu3 %v337_v0  ;;  %503 = vmatmul.f32.vlgmr.msra.gmra.mxu1 %v2377_v1  ;;  %v386_v37 = vld [vmem:[#allocation5 + $0x490] sm:$0xff]  ;;  %v285_v38 = vld [vmem:[#allocation5 + $0x168] sm:$0xff]  ;;  %v387_v39 = vld [vmem:[#allocation5 + $0x498] sm:$0xff] }
  0x54   : > { %585 = vmatmul.f32.vlgmr.msra.gmra.mxu3 %v2377_v1  ;;  %610 = vmatpush.msrb.mxu0 %v332_v2  ;;  %v2404_v40 = vld [vmem:[%s2363_s30 + $0x30] sm:$0xff]  ;;  %v380_v42 = vld [vmem:[#allocation5 + $0x460] sm:$0xff]  ;;  %v2407_v43 = vld [vmem:[%s2363_s30 + $0x38] sm:$0xff] }
  0x55   : > { %692 = vmatpush.msrb.mxu2 %v333_v3  ;;  %651 = vmatpush.msrb.mxu1 %v428_v5  ;;  %v278_v41 = vld [vmem:[#allocation5 + $0x130] sm:$0xff]  ;;  %v279_v44 = vld [vmem:[#allocation5 + $0x138] sm:$0xff]  ;;  %v381_v45 = vld [vmem:[#allocation5 + $0x468] sm:$0xff] }
  0x56   : > { %733 = vmatpush.msrb.mxu3 %v429_v7  ;;  %611 = vmatpush.msrb.mxu0 %v326_v4  ;;  %v272_v46 = vld [vmem:[#allocation5 + $0x100] sm:$0xff]  ;;  %v374_v47 = vld [vmem:[#allocation5 + $0x430] sm:$0xff]  ;;  %v273_v48 = vld [vmem:[#allocation5 + $0x108] sm:$0xff] }
  0x57   : > { %693 = vmatpush.msrb.mxu2 %v327_v6  ;;  %652 = vmatpush.msrb.mxu1 %v422_v8  ;;  %v375_v49 = vld [vmem:[#allocation5 + $0x438] sm:$0xff]  ;;  %v266_v50 = vld [vmem:[#allocation5 + $0xd0] sm:$0xff]  ;;  %v368_v51 = vld [vmem:[#allocation5 + $0x400] sm:$0xff] }
  0x58   : > { %734 = vmatpush.msrb.mxu3 %v423_v11  ;;  %612 = vmatpush.msrb.mxu0 %v320_v9  ;;  %v267_v52 = vld [vmem:[#allocation5 + $0xd8] sm:$0xff]  ;;  %v369_v53 = vld [vmem:[#allocation5 + $0x408] sm:$0xff]  ;;  %v2414_v54 = vld [vmem:[%s2363_s30 + $0x40] sm:$0xff] }
  0x59   : > { %694 = vmatpush.msrb.mxu2 %v321_v10  ;;  %465 = vmatmul.f32.gmra.mxu0 %v2384_v12  ;;  %v260_v55 = vld [vmem:[#allocation5 + $0xa0] sm:$0xff]  ;;  %v362_v56 = vld [vmem:[#allocation5 + $0x3d0] sm:$0xff]  ;;  %v2417_v57 = vld [vmem:[%s2363_s30 + $0x48] sm:$0xff] }
  0x5a   : > { %547 = vmatmul.f32.gmra.mxu2 %v2384_v12  ;;  %613 = vmatpush.msrb.mxu0 %v314_v13  ;;  %v261_v58 = vld [vmem:[#allocation5 + $0xa8] sm:$0xff]  ;;  %v363_v59 = vld [vmem:[#allocation5 + $0x3d8] sm:$0xff]  ;;  %v254_v60 = vld [vmem:[#allocation5 + $0x70] sm:$0xff] }
  0x5b   : > { %653 = vmatpush.msrb.mxu1 %v416_v14  ;;  %695 = vmatpush.msrb.mxu2 %v315_v16  ;;  %v356_v61 = vld [vmem:[#allocation5 + $0x3a0] sm:$0xff]  ;;  %v255_v63 = vld [vmem:[#allocation5 + $0x78] sm:$0xff]  ;;  %v357_v0 = vld [vmem:[#allocation5 + $0x3a8] sm:$0xff] }
  0x5c   : > { %506 = vmatmul.f32.gmra.mxu1 %v2387_v15  ;;  %588 = vmatmul.f32.gmra.mxu3 %v2387_v15  ;;  %v248_v2 = vld [vmem:[#allocation5 + $0x40] sm:$0xff]  ;;  %v350_v3 = vld [vmem:[#allocation5 + $0x370] sm:$0xff]  ;;  %v249_v4 = vld [vmem:[#allocation5 + $0x48] sm:$0xff] }
  0x5d   : > { %735 = vmatpush.msrb.mxu3 %v417_v17  ;;  %614 = vmatpush.msrb.mxu0 %v308_v18  ;;  %v351_v5 = vld [vmem:[#allocation5 + $0x378] sm:$0xff]  ;;  %v2424_v6 = vld [vmem:[%s2363_s30 + $0x50] sm:$0xff]  ;;  %v344_v8 = vld [vmem:[#allocation5 + $0x340] sm:$0xff] }
  0x5e   : > { %654 = vmatpush.msrb.mxu1 %v410_v19  ;;  %696 = vmatpush.msrb.mxu2 %v309_v20  ;;  %v242_v7 = vld [vmem:[#allocation5 + $0x10] sm:$0xff]  ;;  %v2427_v9 = vld [vmem:[%s2363_s30 + $0x58] sm:$0xff]  ;;  %v345_v11 = vld [vmem:[#allocation5 + $0x348] sm:$0xff] }
  0x5f   : > { %736 = vmatpush.msrb.mxu3 %v411_v21  ;;  %615 = vmatpush.msrb.mxu0 %v302_v22  ;;  %v243_v10 = vld [vmem:[#allocation5 + $0x18] sm:$0xff]  ;;  %v338_v13 = vld [vmem:[#allocation5 + $0x310] sm:$0xff]  ;;  %v2434_v16 = vld [vmem:[%s2363_s30 + $0x60] sm:$0xff] }
  0x60   : > { %655 = vmatpush.msrb.mxu1 %v404_v23  ;;  %697 = vmatpush.msrb.mxu2 %v303_v24  ;;  %v339_v14 = vld [vmem:[#allocation5 + $0x318] sm:$0xff]  ;;  %v2437_v17 = vld [vmem:[%s2363_s30 + $0x68] sm:$0xff]  ;;  %v2444_v18 = vld [vmem:[%s2363_s30 + $0x70] sm:$0xff] }
  0x61   : > { %737 = vmatpush.msrb.mxu3 %v405_v25  ;;  %468 = vmatmul.f32.gmra.mxu0 %v2394_v26  ;;  %v2447_v19 = vld [vmem:[%s2363_s30 + $0x78] sm:$0xff]  ;;  %v334_v20 = vld [vmem:[#allocation5 + $0x2f0] sm:$0xff]  ;;  %v328_v21 = vld [vmem:[#allocation5 + $0x2c0] sm:$0xff] }
  0x62   : > { %550 = vmatmul.f32.gmra.mxu2 %v2394_v26  ;;  %616 = vmatpush.msrb.mxu0 %v296_v27  ;;  %v322_v22 = vld [vmem:[#allocation5 + $0x290] sm:$0xff]  ;;  %v316_v23 = vld [vmem:[#allocation5 + $0x260] sm:$0xff]  ;;  %v335_v27 = vld [vmem:[#allocation5 + $0x2f8] sm:$0xff] }
  0x63   : > { %656 = vmatpush.msrb.mxu1 %v398_v28  ;;  %698 = vmatpush.msrb.mxu2 %v297_v30  ;;  %v430_v24 = vld [vmem:[#allocation5 + $0x5f0] sm:$0xff]  ;;  %v424_v25 = vld [vmem:[#allocation5 + $0x5c0] sm:$0xff] }
  0x64   : > { %509 = vmatmul.f32.gmra.mxu1 %v2397_v29  ;;  %591 = vmatmul.f32.gmra.mxu3 %v2397_v29  ;;  %v310_v28 = vld [vmem:[#allocation5 + $0x230] sm:$0xff]  ;;  %v304_v30 = vld [vmem:[#allocation5 + $0x200] sm:$0xff] }
  0x65   : > { %738 = vmatpush.msrb.mxu3 %v399_v31  ;;  %617 = vmatpush.msrb.mxu0 %v290_v32  ;;  %v418_v31 = vld [vmem:[#allocation5 + $0x590] sm:$0xff]  ;;  %v329_v32 = vld [vmem:[#allocation5 + $0x2c8] sm:$0xff] }
  0x66   : > { %657 = vmatpush.msrb.mxu1 %v392_v33  ;;  %699 = vmatpush.msrb.mxu2 %v291_v34  ;;  %v298_v33 = vld [vmem:[#allocation5 + $0x1d0] sm:$0xff]  ;;  %v412_v34 = vld [vmem:[#allocation5 + $0x560] sm:$0xff] }
  0x67   : > { %739 = vmatpush.msrb.mxu3 %v393_v35  ;;  %618 = vmatpush.msrb.mxu0 %v284_v36  ;;  %v323_v35 = vld [vmem:[#allocation5 + $0x298] sm:$0xff]  ;;  %v292_v36 = vld [vmem:[#allocation5 + $0x1a0] sm:$0xff] }
  0x68   : > { %658 = vmatpush.msrb.mxu1 %v386_v37  ;;  %700 = vmatpush.msrb.mxu2 %v285_v38  ;;  %v406_v37 = vld [vmem:[#allocation5 + $0x530] sm:$0xff]  ;;  %v431_v38 = vld [vmem:[#allocation5 + $0x5f8] sm:$0xff] }
  0x69   : > { %740 = vmatpush.msrb.mxu3 %v387_v39  ;;  %471 = vmatmul.f32.gmra.mxu0 %v2404_v40  ;;  %v317_v39 = vld [vmem:[#allocation5 + $0x268] sm:$0xff] }
  0x6a   : > { %553 = vmatmul.f32.gmra.mxu2 %v2404_v40  ;;  %619 = vmatpush.msrb.mxu0 %v278_v41  ;;  %v286_v41 = vld [vmem:[#allocation5 + $0x170] sm:$0xff] }
  0x6b   : > { %659 = vmatpush.msrb.mxu1 %v380_v42  ;;  %701 = vmatpush.msrb.mxu2 %v279_v44  ;;  %v425_v42 = vld [vmem:[#allocation5 + $0x5c8] sm:$0xff]  ;;  %v400_v44 = vld [vmem:[#allocation5 + $0x500] sm:$0xff] }
  0x6c   : > { %512 = vmatmul.f32.gmra.mxu1 %v2407_v43  ;;  %594 = vmatmul.f32.gmra.mxu3 %v2407_v43 }
  0x6d   : > { %741 = vmatpush.msrb.mxu3 %v381_v45  ;;  %620 = vmatpush.msrb.mxu0 %v272_v46  ;;  %v311_v45 = vld [vmem:[#allocation5 + $0x238] sm:$0xff]  ;;  %v280_v46 = vld [vmem:[#allocation5 + $0x140] sm:$0xff] }
  0x6e   : > { %660 = vmatpush.msrb.mxu1 %v374_v47  ;;  %702 = vmatpush.msrb.mxu2 %v273_v48  ;;  %v394_v47 = vld [vmem:[#allocation5 + $0x4d0] sm:$0xff]  ;;  %v305_v48 = vld [vmem:[#allocation5 + $0x208] sm:$0xff] }
  0x6f   : > { %742 = vmatpush.msrb.mxu3 %v375_v49  ;;  %621 = vmatpush.msrb.mxu0 %v266_v50  ;;  %v419_v49 = vld [vmem:[#allocation5 + $0x598] sm:$0xff]  ;;  %v274_v50 = vld [vmem:[#allocation5 + $0x110] sm:$0xff] }
  0x70   : > { %661 = vmatpush.msrb.mxu1 %v368_v51  ;;  %703 = vmatpush.msrb.mxu2 %v267_v52  ;;  %v388_v51 = vld [vmem:[#allocation5 + $0x4a0] sm:$0xff]  ;;  %v299_v52 = vld [vmem:[#allocation5 + $0x1d8] sm:$0xff] }
  0x71   : > { %743 = vmatpush.msrb.mxu3 %v369_v53  ;;  %474 = vmatmul.f32.gmra.mxu0 %v2414_v54  ;;  %v413_v53 = vld [vmem:[#allocation5 + $0x568] sm:$0xff] }
  0x72   : > { %556 = vmatmul.f32.gmra.mxu2 %v2414_v54  ;;  %622 = vmatpush.msrb.mxu0 %v260_v55  ;;  %v268_v55 = vld [vmem:[#allocation5 + $0xe0] sm:$0xff] }
  0x73   : > { %662 = vmatpush.msrb.mxu1 %v362_v56  ;;  %704 = vmatpush.msrb.mxu2 %v261_v58  ;;  %v382_v56 = vld [vmem:[#allocation5 + $0x470] sm:$0xff]  ;;  %v293_v58 = vld [vmem:[#allocation5 + $0x1a8] sm:$0xff] }
  0x74   : > { %515 = vmatmul.f32.gmra.mxu1 %v2417_v57  ;;  %597 = vmatmul.f32.gmra.mxu3 %v2417_v57 }
  0x75   : > { %744 = vmatpush.msrb.mxu3 %v363_v59  ;;  %623 = vmatpush.msrb.mxu0 %v254_v60  ;;  %v407_v59 = vld [vmem:[#allocation5 + $0x538] sm:$0xff]  ;;  %v262_v60 = vld [vmem:[#allocation5 + $0xb0] sm:$0xff] }
  0x76   : > { %663 = vmatpush.msrb.mxu1 %v356_v61  ;;  %705 = vmatpush.msrb.mxu2 %v255_v63  ;;  %v376_v61 = vld [vmem:[#allocation5 + $0x440] sm:$0xff]  ;;  %v287_v63 = vld [vmem:[#allocation5 + $0x178] sm:$0xff] }
  0x77   : > { %745 = vmatpush.msrb.mxu3 %v357_v0  ;;  %624 = vmatpush.msrb.mxu0 %v248_v2  ;;  %v401_v0 = vld [vmem:[#allocation5 + $0x508] sm:$0xff]  ;;  %v256_v2 = vld [vmem:[#allocation5 + $0x80] sm:$0xff] }
  0x78   : > { %664 = vmatpush.msrb.mxu1 %v350_v3  ;;  %706 = vmatpush.msrb.mxu2 %v249_v4  ;;  %v370_v3 = vld [vmem:[#allocation5 + $0x410] sm:$0xff]  ;;  %v281_v4 = vld [vmem:[#allocation5 + $0x148] sm:$0xff] }
  0x79   : > { %746 = vmatpush.msrb.mxu3 %v351_v5  ;;  %477 = vmatmul.f32.gmra.mxu0 %v2424_v6  ;;  %v395_v5 = vld [vmem:[#allocation5 + $0x4d8] sm:$0xff] }
  0x7a   : > { %559 = vmatmul.f32.gmra.mxu2 %v2424_v6  ;;  %625 = vmatpush.msrb.mxu0 %v242_v7  ;;  %v250_v7 = vld [vmem:[#allocation5 + $0x50] sm:$0xff] }
  0x7b   : > { %665 = vmatpush.msrb.mxu1 %v344_v8  ;;  %707 = vmatpush.msrb.mxu2 %v243_v10  ;;  %v364_v8 = vld [vmem:[#allocation5 + $0x3e0] sm:$0xff]  ;;  %v275_v10 = vld [vmem:[#allocation5 + $0x118] sm:$0xff] }
  0x7c   : > { %518 = vmatmul.f32.gmra.mxu1 %v2427_v9  ;;  %600 = vmatmul.f32.gmra.mxu3 %v2427_v9 }
  0x7d   : > { %747 = vmatpush.msrb.mxu3 %v345_v11  ;;  %666 = vmatpush.msrb.mxu1 %v338_v13  ;;  %v389_v11 = vld [vmem:[#allocation5 + $0x4a8] sm:$0xff]  ;;  %v244_v13 = vld [vmem:[#allocation5 + $0x20] sm:$0xff] }
  0x7e   : > { %774 = vmatpush.msra.mxu0 %v334_v20  ;;  %856 = vmatpush.msra.mxu2 %v335_v27  ;;  %v269_v20 = vld [vmem:[#allocation5 + $0xe8] sm:$0xff] }
  0x7f   : > { %748 = vmatpush.msrb.mxu3 %v339_v14  ;;  %815 = vmatpush.msra.mxu1 %v430_v24  ;;  %v358_v14 = vld [vmem:[#allocation5 + $0x3b0] sm:$0xff]  ;;  %v377_v24 = vld [vmem:[#allocation5 + $0x448] sm:$0xff] }
  0x80   : > { %775 = vmatpush.msra.mxu0 %v328_v21  ;;  %857 = vmatpush.msra.mxu2 %v329_v32  ;;  %v383_v21 = vld [vmem:[#allocation5 + $0x478] sm:$0xff]  ;;  %v257_v27 = vld [vmem:[#allocation5 + $0x88] sm:$0xff] }
  0x81   : > { %480 = vmatmul.f32.gmra.mxu0 %v2434_v16  ;;  %816 = vmatpush.msra.mxu1 %v424_v25  ;;  %v346_v25 = vld [vmem:[#allocation5 + $0x350] sm:$0xff]  ;;  %v365_v32 = vld [vmem:[#allocation5 + $0x3e8] sm:$0xff] }
  0x82   : > { %562 = vmatmul.f32.gmra.mxu2 %v2434_v16  ;;  %776 = vmatpush.msra.mxu0 %v322_v22  ;;  %v352_v22 = vld [vmem:[#allocation5 + $0x380] sm:$0xff] }
  0x83   : > { %817 = vmatpush.msra.mxu1 %v418_v31  ;;  %897 = vmatpush.msra.mxu3 %v431_v38  ;;  %v251_v31 = vld [vmem:[#allocation5 + $0x58] sm:$0xff] }
  0x84   : > { %521 = vmatmul.f32.gmra.mxu1 %v2437_v17  ;;  %603 = vmatmul.f32.gmra.mxu3 %v2437_v17 }
  0x85   : > { %777 = vmatpush.msra.mxu0 %v316_v23  ;;  %818 = vmatpush.msra.mxu1 %v412_v34  ;;  %v263_v23 = vld [vmem:[#allocation5 + $0xb8] sm:$0xff] }
  0x86   : > { %858 = vmatpush.msra.mxu2 %v323_v35  ;;  %898 = vmatpush.msra.mxu3 %v425_v42  ;;  %v359_v34 = vld [vmem:[#allocation5 + $0x3b8] sm:$0xff]  ;;  %v353_v35 = vld [vmem:[#allocation5 + $0x388] sm:$0xff] }
  0x87   : > { %778 = vmatpush.msra.mxu0 %v310_v28  ;;  %819 = vmatpush.msra.mxu1 %v406_v37  ;;  %v371_v28 = vld [vmem:[#allocation5 + $0x418] sm:$0xff]  ;;  %v341_v37 = vld [vmem:[#allocation5 + $0x328] sm:$0xff] }
  0x88   : > { %859 = vmatpush.msra.mxu2 %v317_v39  ;;  %899 = vmatpush.msra.mxu3 %v419_v49 }
  0x89   : > { %483 = vmatmul.f32.gmra.mxu0 %v2444_v18  ;;  %820 = vmatpush.msra.mxu1 %v400_v44 }
  0x8a   : > { %565 = vmatmul.f32.gmra.mxu2 %v2444_v18  ;;  %779 = vmatpush.msra.mxu0 %v304_v30  ;;  %v340_v30 = vld [vmem:[#allocation5 + $0x320] sm:$0xff] }
  0x8b   : > { %860 = vmatpush.msra.mxu2 %v311_v45  ;;  %821 = vmatpush.msra.mxu1 %v394_v47 }
  0x8c   : > { %524 = vmatmul.f32.gmra.mxu1 %v2447_v19  ;;  %606 = vmatmul.f32.gmra.mxu3 %v2447_v19 }
  0x8d   : > { %780 = vmatpush.msra.mxu0 %v298_v33  ;;  %861 = vmatpush.msra.mxu2 %v305_v48  ;;  %v245_v33 = vld [vmem:[#allocation5 + $0x28] sm:$0xff] }
  0x8e   : > { %822 = vmatpush.msra.mxu1 %v388_v51  ;;  %900 = vmatpush.msra.mxu3 %v413_v53 }
  0x8f   : > { %781 = vmatpush.msra.mxu0 %v292_v36  ;;  %862 = vmatpush.msra.mxu2 %v299_v52  ;;  %v347_v36 = vld [vmem:[#allocation5 + $0x358] sm:$0xff] }
  0x90   : > { %823 = vmatpush.msra.mxu1 %v382_v56  ;;  %901 = vmatpush.msra.mxu3 %v407_v59 }
  0x91   : > { %626 = vmatmul.f32.vlgmr.msrb.gmra.mxu0 %v2374_v62  ;;  %863 = vmatpush.msra.mxu2 %v293_v58 }
  0x92   : > { %708 = vmatmul.f32.vlgmr.msrb.gmra.mxu2 %v2374_v62  ;;  %782 = vmatpush.msra.mxu0 %v286_v41 }
  0x93   : > { %824 = vmatpush.msra.mxu1 %v376_v61  ;;  %864 = vmatpush.msra.mxu2 %v287_v63 }
  0x94   : > { %667 = vmatmul.f32.vlgmr.msrb.gmra.mxu1 %v2377_v1  ;;  %749 = vmatmul.f32.vlgmr.msrb.gmra.mxu3 %v2377_v1 }
  0x95   : > { %783 = vmatpush.msra.mxu0 %v280_v46  ;;  %902 = vmatpush.msra.mxu3 %v401_v0 }
  0x96   : > { %825 = vmatpush.msra.mxu1 %v370_v3  ;;  %865 = vmatpush.msra.mxu2 %v281_v4 }
  0x97   : > { %784 = vmatpush.msra.mxu0 %v274_v50  ;;  %903 = vmatpush.msra.mxu3 %v395_v5 }
  0x98   : > { %826 = vmatpush.msra.mxu1 %v364_v8  ;;  %866 = vmatpush.msra.mxu2 %v275_v10 }
  0x99   : > { %629 = vmatmul.f32.gmra.mxu0 %v2384_v12  ;;  %904 = vmatpush.msra.mxu3 %v389_v11 }
  0x9a   : > { %711 = vmatmul.f32.gmra.mxu2 %v2384_v12  ;;  %785 = vmatpush.msra.mxu0 %v268_v55 }
  0x9b   : > { %827 = vmatpush.msra.mxu1 %v358_v14  ;;  %867 = vmatpush.msra.mxu2 %v269_v20 }
  0x9c   : > { %670 = vmatmul.f32.gmra.mxu1 %v2387_v15  ;;  %752 = vmatmul.f32.gmra.mxu3 %v2387_v15 }
  0x9d   : > { %786 = vmatpush.msra.mxu0 %v262_v60  ;;  %905 = vmatpush.msra.mxu3 %v383_v21  ;;  %v2573_v60 = vld [vmem:[#allocation7] sm:$0x3f] }
  0x9e   : > { %828 = vmatpush.msra.mxu1 %v352_v22  ;;  %868 = vmatpush.msra.mxu2 %v263_v23  ;;  %v2593_v5 = vperm.slane %v2573_v60, 3 }
  0x9f   : > { %787 = vmatpush.msra.mxu0 %v256_v2  ;;  %906 = vmatpush.msra.mxu3 %v377_v24 }
  0xa0   : > { %829 = vmatpush.msra.mxu1 %v346_v25  ;;  %869 = vmatpush.msra.mxu2 %v257_v27 }
  0xa1   : > { %632 = vmatmul.f32.gmra.mxu0 %v2394_v26  ;;  %907 = vmatpush.msra.mxu3 %v371_v28 }
  0xa2   : > { %714 = vmatmul.f32.gmra.mxu2 %v2394_v26  ;;  %788 = vmatpush.msra.mxu0 %v250_v7 }
  0xa3   : > { %830 = vmatpush.msra.mxu1 %v340_v30  ;;  %870 = vmatpush.msra.mxu2 %v251_v31 }
  0xa4   : > { %673 = vmatmul.f32.gmra.mxu1 %v2397_v29  ;;  %755 = vmatmul.f32.gmra.mxu3 %v2397_v29 }
  0xa5   : > { %789 = vmatpush.msra.mxu0 %v244_v13  ;;  %908 = vmatpush.msra.mxu3 %v365_v32 }
  0xa6   : > { %871 = vmatpush.msra.mxu2 %v245_v33 }
  0xa7   : > { %909 = vmatpush.msra.mxu3 %v359_v34 }
  0xa9   : > { %635 = vmatmul.f32.gmra.mxu0 %v2404_v40  ;;  %910 = vmatpush.msra.mxu3 %v353_v35 }
  0xaa   : > { %717 = vmatmul.f32.gmra.mxu2 %v2404_v40 }
  0xab   : > { %911 = vmatpush.msra.mxu3 %v347_v36 }
  0xac   : > { %676 = vmatmul.f32.gmra.mxu1 %v2407_v43  ;;  %758 = vmatmul.f32.gmra.mxu3 %v2407_v43 }
  0xad   : > { %912 = vmatpush.msra.mxu3 %v341_v37 }
  0xb1   : > { %638 = vmatmul.f32.gmra.mxu0 %v2414_v54 }
  0xb2   : > { %720 = vmatmul.f32.gmra.mxu2 %v2414_v54 }
  0xb4   : > { %679 = vmatmul.f32.gmra.mxu1 %v2417_v57  ;;  %761 = vmatmul.f32.gmra.mxu3 %v2417_v57 }
  0xb9   : > { %641 = vmatmul.f32.gmra.mxu0 %v2424_v6 }
  0xba   : > { %723 = vmatmul.f32.gmra.mxu2 %v2424_v6 }
  0xbc   : > { %682 = vmatmul.f32.gmra.mxu1 %v2427_v9  ;;  %764 = vmatmul.f32.gmra.mxu3 %v2427_v9 }
  0xc1   : > { %644 = vmatmul.f32.gmra.mxu0 %v2434_v16 }
  0xc2   : > { %726 = vmatmul.f32.gmra.mxu2 %v2434_v16 }
  0xc4   : > { %685 = vmatmul.f32.gmra.mxu1 %v2437_v17  ;;  %767 = vmatmul.f32.gmra.mxu3 %v2437_v17 }
  0xc9   : > { %647 = vmatmul.f32.gmra.mxu0 %v2444_v18 }
  0xca   : > { %729 = vmatmul.f32.gmra.mxu2 %v2444_v18 }
  0xcc   : > { %688 = vmatmul.f32.gmra.mxu1 %v2447_v19  ;;  %770 = vmatmul.f32.gmra.mxu3 %v2447_v19 }
  0xce   : > { %v2485_v38 = vpop.f32.mrf.mxu0 }
  0xd0   : > { %v2487_v39 = vpop.f32.mrf.mxu1 }
  0xd1   : > { %790 = vmatmul.f32.vlgmr.msra.gmra.mxu0 %v2374_v62 }
  0xd2   : > { %872 = vmatmul.f32.vlgmr.msra.gmra.mxu2 %v2374_v62 }
  0xd4   : > { %831 = vmatmul.f32.vlgmr.msra.gmra.mxu1 %v2377_v1  ;;  %913 = vmatmul.f32.vlgmr.msra.gmra.mxu3 %v2377_v1 }
  0xd5   : > { %v2493_v41 = vpop.f32.mrf.mxu2 }
  0xd6   : > { %v2495_v42 = vpop.f32.mrf.mxu0 }
  0xd7   : > { %v2497_v44 = vpop.f32.mrf.mxu3 }
  0xd9   : > { %v2499_v45 = vpop.f32.mrf.mxu1  ;;  %793 = vmatmul.f32.gmra.mxu0 %v2384_v12 }
  0xda   : > { %875 = vmatmul.f32.gmra.mxu2 %v2384_v12 }
  0xdc   : > { %834 = vmatmul.f32.gmra.mxu1 %v2387_v15  ;;  %916 = vmatmul.f32.gmra.mxu3 %v2387_v15 }
  0xdd   : > { %v2505_v62 = vpop.f32.mrf.mxu2 }
  0xde   : > { %v2507_v46 = vpop.f32.mrf.mxu0 }
  0xdf   : > { %v2509_v1 = vpop.f32.mrf.mxu3 }
  0xe1   : > { %v2511_v47 = vpop.f32.mrf.mxu1  ;;  %796 = vmatmul.f32.gmra.mxu0 %v2394_v26 }
  0xe2   : > { %878 = vmatmul.f32.gmra.mxu2 %v2394_v26 }
  0xe4   : > { %837 = vmatmul.f32.gmra.mxu1 %v2397_v29  ;;  %919 = vmatmul.f32.gmra.mxu3 %v2397_v29 }
  0xe5   : > { %v2517_v12 = vpop.f32.mrf.mxu2 }
  0xe6   : > { %v2519_v48 = vpop.f32.mrf.mxu0 }
  0xe7   : > { %v2521_v15 = vpop.f32.mrf.mxu3 }
  0xe9   : > { %v2523_v49 = vpop.f32.mrf.mxu1  ;;  %799 = vmatmul.f32.gmra.mxu0 %v2404_v40 }
  0xea   : > { %881 = vmatmul.f32.gmra.mxu2 %v2404_v40 }
  0xec   : > { %840 = vmatmul.f32.gmra.mxu1 %v2407_v43  ;;  %922 = vmatmul.f32.gmra.mxu3 %v2407_v43 }
  0xed   : > { %v2529_v26 = vpop.f32.mrf.mxu2 }
  0xee   : > { %v2531_v50 = vpop.f32.mrf.mxu0 }
  0xef   : > { %v2533_v29 = vpop.f32.mrf.mxu3 }
  0xf1   : > { %v2535_v51 = vpop.f32.mrf.mxu1  ;;  %802 = vmatmul.f32.gmra.mxu0 %v2414_v54 }
  0xf2   : > { %884 = vmatmul.f32.gmra.mxu2 %v2414_v54 }
  0xf4   : > { %843 = vmatmul.f32.gmra.mxu1 %v2417_v57  ;;  %925 = vmatmul.f32.gmra.mxu3 %v2417_v57 }
  0xf5   : > { %v2541_v40 = vpop.f32.mrf.mxu2 }
  0xf6   : > { %v2543_v52 = vpop.f32.mrf.mxu0 }
  0xf7   : > { %v2545_v43 = vpop.f32.mrf.mxu3 }
  0xf9   : > { %v2547_v53 = vpop.f32.mrf.mxu1  ;;  %805 = vmatmul.f32.gmra.mxu0 %v2424_v6 }
  0xfa   : > { %887 = vmatmul.f32.gmra.mxu2 %v2424_v6 }
  0xfc   : > { %846 = vmatmul.f32.gmra.mxu1 %v2427_v9  ;;  %928 = vmatmul.f32.gmra.mxu3 %v2427_v9 }
  0xfd   : > { %v2553_v54 = vpop.f32.mrf.mxu2 }
  0xfe   : > { %v2555_v55 = vpop.f32.mrf.mxu0 }
  0xff   : > { %v2557_v57 = vpop.f32.mrf.mxu3 }
 0x101   : > { %v2559_v56 = vpop.f32.mrf.mxu1  ;;  %808 = vmatmul.f32.gmra.mxu0 %v2434_v16 }
 0x102   : > { %890 = vmatmul.f32.gmra.mxu2 %v2434_v16  ;;  %v2578_v16 = vperm.slane %v2573_v60, 2 }
 0x104   : > { %849 = vmatmul.f32.gmra.mxu1 %v2437_v17  ;;  %931 = vmatmul.f32.gmra.mxu3 %v2437_v17  ;;  %v2583_v17 = vperm.slane %v2573_v60, 0 }
 0x105   : > { %v2565_v6 = vpop.f32.mrf.mxu2 }
 0x106   : > { %v2567_v58 = vpop.f32.mrf.mxu0  ;;  %v467_v22 = vadd.f32 %v2495_v42, %v2583_v17  ;;  %v470_v36 = vadd.f32 %v2507_v46, %v2583_v17 }
 0x107   : > { %v2569_v9 = vpop.f32.mrf.mxu3 }
 0x108   : > { %v508_v27 = vadd.f32 %v2499_v45, %v467_v22 }
 0x109   : > { %v2571_v59 = vpop.f32.mrf.mxu1  ;;  %811 = vmatmul.f32.gmra.mxu0 %v2444_v18 }
 0x10a   : > { %893 = vmatmul.f32.gmra.mxu2 %v2444_v18  ;;  %v464_v18 = vadd.f32 %v2485_v38, %v2583_v17 }
 0x10c   : > { %852 = vmatmul.f32.gmra.mxu1 %v2447_v19  ;;  %934 = vmatmul.f32.gmra.mxu3 %v2447_v19  ;;  %v2596_v19 = vperm.slane %v2573_v60, 1  ;;  %v505_v7 = vadd.f32 %v2487_v39, %v464_v18  ;;  %v473_v18 = vadd.f32 %v2519_v48, %v2583_v17 }
 0x10d   : > { %v2585_v61 = vpop.f32.mrf.mxu2 }
 0x10e   : > { %v627_v0 = vpop.f32.mrf.mxu0  ;;  %v546_v11 = vadd.f32 %v2493_v41, %v2596_v19  ;;  %v549_v31 = vadd.f32 %v2505_v62, %v2596_v19  ;;  %v511_v41 = vadd.f32 %v2511_v47, %v470_v36  ;;  %v552_v45 = vadd.f32 %v2517_v12, %v2596_v19 }
 0x10f   : > { %v2587_v63 = vpop.f32.mrf.mxu3  ;;  %v628_v2 = vadd.f32 %v627_v0, %v2578_v16 }
 0x110   : > { %v587_v25 = vadd.f32 %v2497_v44, %v546_v11  ;;  %v590_v39 = vadd.f32 %v2509_v1, %v549_v31  ;;  %v593_v47 = vadd.f32 %v2521_v15, %v552_v45 }
 0x111   : > { %v668_v3 = vpop.f32.mrf.mxu1 }
 0x112   : > { %v669_v4 = vadd.f32 %v668_v3, %v628_v2 }
 0x114   : > { %953 = vmatpush.xpose.msrb.mxu0 %v669_v4  ;;  %v514_v4 = vadd.f32 %v2523_v49, %v473_v18 }
 0x115   : > { %v709_v8 = vpop.f32.mrf.mxu2 }
 0x116   : > { %v710_v10 = vadd.f32 %v709_v8, %v2593_v5  ;;  %v630_v13 = vpop.f32.mrf.mxu0  ;;  %v555_v8 = vadd.f32 %v2529_v26, %v2596_v19 }
 0x117   : > { %v750_v14 = vpop.f32.mrf.mxu3  ;;  %954 = vmatmul.f32.vlgmr.msrb.gmra.mxu0 %v505_v7  ;;  %v631_v20 = vadd.f32 %v630_v13, %v2578_v16 }
 0x118   : > { %v751_v21 = vadd.f32 %v750_v14, %v710_v10  ;;  %v476_v14 = vadd.f32 %v2531_v50, %v2583_v17  ;;  %v596_v49 = vadd.f32 %v2533_v29, %v555_v8 }
 0x119   : > { %v671_v23 = vpop.f32.mrf.mxu1 }
 0x11a   : > { %v672_v24 = vadd.f32 %v671_v23, %v631_v20  ;;  %973 = vmatpush.xpose.msrb.mxu1 %v751_v21  ;;  %v517_v21 = vadd.f32 %v2535_v51, %v476_v14  ;;  %v558_v23 = vadd.f32 %v2541_v40, %v2596_v19 }
 0x11c   : > { %993 = vmatpush.xpose.msrb.mxu2 %v672_v24  ;;  %v599_v51 = vadd.f32 %v2545_v43, %v558_v23 }
 0x11d   : > { %v712_v28 = vpop.f32.mrf.mxu2  ;;  %974 = vmatmul.f32.vlgmr.msrb.gmra.mxu1 %v587_v25 }
 0x11e   : > { %v713_v30 = vadd.f32 %v712_v28, %v2593_v5  ;;  %v633_v32 = vpop.f32.mrf.mxu0  ;;  %v479_v28 = vadd.f32 %v2543_v52, %v2583_v17 }
 0x11f   : > { %v753_v33 = vpop.f32.mrf.mxu3  ;;  %994 = vmatmul.f32.vlgmr.msrb.gmra.mxu2 %v508_v27  ;;  %v634_v34 = vadd.f32 %v633_v32, %v2578_v16 }
 0x120   : > { %v754_v35 = vadd.f32 %v753_v33, %v713_v30  ;;  %v520_v31 = vadd.f32 %v2547_v53, %v479_v28  ;;  %v561_v33 = vadd.f32 %v2553_v54, %v2596_v19 }
 0x121   : > { %v674_v37 = vpop.f32.mrf.mxu1 }
 0x122   : > { %v675_v38 = vadd.f32 %v674_v37, %v634_v34  ;;  %1013 = vmatpush.xpose.msrb.mxu3 %v754_v35  ;;  %v482_v37 = vadd.f32 %v2555_v55, %v2583_v17  ;;  %v602_v53 = vadd.f32 %v2557_v57, %v561_v33 }
 0x124   : > { %1033 = vmatpush.xpose.msra.mxu0 %v675_v38 }
 0x125   : > { %v715_v42 = vpop.f32.mrf.mxu2  ;;  %1014 = vmatmul.f32.vlgmr.msrb.gmra.mxu3 %v590_v39  ;;  %v523_v39 = vadd.f32 %v2559_v56, %v482_v37 }
 0x126   : > { %v716_v44 = vadd.f32 %v715_v42, %v2593_v5  ;;  %v636_v62 = vpop.f32.mrf.mxu0  ;;  %v564_v42 = vadd.f32 %v2565_v6, %v2596_v19 }
 0x127   : > { %v756_v0 = vpop.f32.mrf.mxu3  ;;  %1034 = vmatmul.f32.vlgmr.msra.gmra.mxu0 %v511_v41  ;;  %v637_v46 = vadd.f32 %v636_v62, %v2578_v16 }
 0x128   : > { %v757_v2 = vadd.f32 %v756_v0, %v716_v44  ;;  %v485_v0 = vadd.f32 %v2567_v58, %v2583_v17  ;;  %v605_v56 = vadd.f32 %v2569_v9, %v564_v42 }
 0x129   : > { %v677_v1 = vpop.f32.mrf.mxu1 }
 0x12a   : > { %v678_v3 = vadd.f32 %v677_v1, %v637_v46  ;;  %1053 = vmatpush.xpose.msra.mxu1 %v757_v2  ;;  %v2655_v2 = vperm.slane %v2573_v60, 4  ;;  %v526_v6 = vadd.f32 %v2571_v59, %v485_v0 }
 0x12c   : > { %1073 = vmatpush.xpose.msra.mxu2 %v678_v3 }
 0x12d   : > { %v718_v7 = vpop.f32.mrf.mxu2  ;;  %1054 = vmatmul.f32.vlgmr.msra.gmra.mxu1 %v593_v47 }
 0x12e   : > { %v719_v12 = vadd.f32 %v718_v7, %v2593_v5  ;;  %v639_v10 = vpop.f32.mrf.mxu0  ;;  %v2663_v7 = vperm.slane %v2573_v60, 5 }
 0x12f   : > { %v759_v11 = vpop.f32.mrf.mxu3  ;;  %1074 = vmatmul.f32.vlgmr.msra.gmra.mxu2 %v514_v4  ;;  %v640_v48 = vadd.f32 %v639_v10, %v2578_v16 }
 0x130   : > { %v760_v13 = vadd.f32 %v759_v11, %v719_v12 }
 0x131   : > { %v680_v15 = vpop.f32.mrf.mxu1 }
 0x132   : > { %v681_v20 = vadd.f32 %v680_v15, %v640_v48  ;;  %1093 = vmatpush.xpose.msra.mxu3 %v760_v13 }
 0x134   : > { %1113 = vmatpush.xpose.msrb.mxu0 %v681_v20 }
 0x135   : > { %v721_v22 = vpop.f32.mrf.mxu2  ;;  %1094 = vmatmul.f32.vlgmr.msra.gmra.mxu3 %v596_v49 }
 0x136   : > { %v722_v26 = vadd.f32 %v721_v22, %v2593_v5  ;;  %v642_v24 = vpop.f32.mrf.mxu0 }
 0x137   : > { %v762_v25 = vpop.f32.mrf.mxu3  ;;  %1114 = vmatmul.f32.vlgmr.msrb.gmra.mxu0 %v517_v21  ;;  %v643_v50 = vadd.f32 %v642_v24, %v2578_v16 }
 0x138   : > { %v763_v27 = vadd.f32 %v762_v25, %v722_v26 }
 0x139   : > { %v683_v29 = vpop.f32.mrf.mxu1 }
 0x13a   : > { %v684_v30 = vadd.f32 %v683_v29, %v643_v50  ;;  %1133 = vmatpush.xpose.msrb.mxu1 %v763_v27 }
 0x13c   : > { %1153 = vmatpush.xpose.msrb.mxu2 %v684_v30 }
 0x13d   : > { %v724_v32 = vpop.f32.mrf.mxu2  ;;  %1134 = vmatmul.f32.vlgmr.msrb.gmra.mxu1 %v599_v51 }
 0x13e   : > { %v725_v40 = vadd.f32 %v724_v32, %v2593_v5  ;;  %v645_v34 = vpop.f32.mrf.mxu0 }
 0x13f   : > { %v765_v35 = vpop.f32.mrf.mxu3  ;;  %1154 = vmatmul.f32.vlgmr.msrb.gmra.mxu2 %v520_v31  ;;  %v646_v52 = vadd.f32 %v645_v34, %v2578_v16 }
 0x140   : > { %v766_v36 = vadd.f32 %v765_v35, %v725_v40 }
 0x141   : > { %v686_v43 = vpop.f32.mrf.mxu1 }
 0x142   : > { %v687_v38 = vadd.f32 %v686_v43, %v646_v52  ;;  %1173 = vmatpush.xpose.msrb.mxu3 %v766_v36 }
 0x144   : > { %1193 = vmatpush.xpose.msra.mxu0 %v687_v38 }
 0x145   : > { %v727_v41 = vpop.f32.mrf.mxu2  ;;  %1174 = vmatmul.f32.vlgmr.msrb.gmra.mxu3 %v602_v53 }
 0x146   : > { %v728_v54 = vadd.f32 %v727_v41, %v2593_v5  ;;  %v648_v44 = vpop.f32.mrf.mxu0 }
 0x147   : > { %v768_v45 = vpop.f32.mrf.mxu3  ;;  %1194 = vmatmul.f32.vlgmr.msra.gmra.mxu0 %v523_v39  ;;  %v649_v55 = vadd.f32 %v648_v44, %v2578_v16  ;;  %v567_v16 = vadd.f32 %v2585_v61, %v2596_v19 }
 0x148   : > { %v769_v62 = vadd.f32 %v768_v45, %v728_v54 }
 0x149   : > { %v689_v57 = vpop.f32.mrf.mxu1  ;;  %v608_v59 = vadd.f32 %v2587_v63, %v567_v16 }
 0x14a   : > { %v690_v46 = vadd.f32 %v689_v57, %v649_v55  ;;  %1213 = vmatpush.xpose.msra.mxu1 %v769_v62 }
 0x14c   : > { %1233 = vmatpush.xpose.msra.mxu2 %v690_v46 }
 0x14d   : > { %v730_v18 = vpop.f32.mrf.mxu2  ;;  %1214 = vmatmul.f32.vlgmr.msra.gmra.mxu1 %v605_v56 }
 0x14e   : > { %v731_v1 = vadd.f32 %v730_v18, %v2593_v5  ;;  %v791_v58 = vpop.f32.mrf.mxu0 }
 0x14f   : > { %v771_v3 = vpop.f32.mrf.mxu3  ;;  %1234 = vmatmul.f32.vlgmr.msra.gmra.mxu2 %v526_v6  ;;  %v792_v47 = vadd.f32 %v791_v58, %v2655_v2 }
 0x150   : > { %v772_v17 = vadd.f32 %v771_v3, %v731_v1 }
 0x151   : > { %v832_v9 = vpop.f32.mrf.mxu1 }
 0x152   : > { %1253 = vmatpush.xpose.msra.mxu3 %v772_v17  ;;  %v833_v4 = vadd.f32 %v832_v9, %v792_v47 }
 0x154   : > { %1365 = vmatpush.msrb.mxu0 %v833_v4 }
 0x155   : > { %1254 = vmatmul.f32.vlgmr.msra.gmra.mxu3 %v608_v59  ;;  %v873_v5 = vpop.f32.mrf.mxu2 }
 0x156   : > { %v874_v12 = vadd.f32 %v873_v5, %v2663_v7  ;;  %v794_v61 = vpop.f32.mrf.mxu0 }
 0x157   : > { %v914_v19 = vpop.f32.mrf.mxu3  ;;  %v795_v8 = vadd.f32 %v794_v61, %v2655_v2 }
 0x158   : > { %v915_v10 = vadd.f32 %v914_v19, %v874_v12 }
 0x159   : > { %v835_v11 = vpop.f32.mrf.mxu1 }
 0x15a   : > { %v836_v48 = vadd.f32 %v835_v11, %v795_v8  ;;  %1385 = vmatpush.msrb.mxu1 %v915_v10 }
 0x15c   : > { %1408 = vmatpush.msrb.mxu2 %v836_v48 }
 0x15d   : > { %v876_v13 = vpop.f32.mrf.mxu2 }
 0x15e   : > { %v877_v60 = vadd.f32 %v876_v13, %v2663_v7  ;;  %v797_v14 = vpop.f32.mrf.mxu0 }
 0x15f   : > { %v917_v15 = vpop.f32.mrf.mxu3  ;;  %v798_v63 = vadd.f32 %v797_v14, %v2655_v2 }
 0x160   : > { %v918_v20 = vadd.f32 %v917_v15, %v877_v60 }
 0x161   : > { %v838_v49 = vpop.f32.mrf.mxu1 }
 0x162   : > { %v839_v21 = vadd.f32 %v838_v49, %v798_v63  ;;  %1428 = vmatpush.msrb.mxu3 %v918_v20 }
 0x164   : > { %1451 = vmatpush.msra.mxu0 %v839_v21 }
 0x165   : > { %v879_v22 = vpop.f32.mrf.mxu2 }
 0x166   : > { %v880_v26 = vadd.f32 %v879_v22, %v2663_v7  ;;  %v800_v23 = vpop.f32.mrf.mxu0 }
 0x167   : > { %v920_v24 = vpop.f32.mrf.mxu3  ;;  %v801_v25 = vadd.f32 %v800_v23, %v2655_v2 }
 0x168   : > { %v921_v50 = vadd.f32 %v920_v24, %v880_v26 }
 0x169   : > { %v841_v27 = vpop.f32.mrf.mxu1 }
 0x16a   : > { %v842_v28 = vadd.f32 %v841_v27, %v801_v25  ;;  %1471 = vmatpush.msra.mxu1 %v921_v50 }
 0x16c   : > { %1494 = vmatpush.msra.mxu2 %v842_v28 }
 0x16d   : > { %v882_v29 = vpop.f32.mrf.mxu2 }
 0x16e   : > { %v883_v30 = vadd.f32 %v882_v29, %v2663_v7  ;;  %v803_v51 = vpop.f32.mrf.mxu0 }
 0x16f   : > { %v923_v31 = vpop.f32.mrf.mxu3  ;;  %v804_v32 = vadd.f32 %v803_v51, %v2655_v2 }
 0x170   : > { %v924_v40 = vadd.f32 %v923_v31, %v883_v30 }
 0x171   : > { %v844_v33 = vpop.f32.mrf.mxu1 }
 0x172   : > { %v2674_v34 = vadd.f32 %v844_v33, %v804_v32  ;;  %1514 = vmatpush.msra.mxu3 %v924_v40 }
 0x175   : > { %v885_v35 = vpop.f32.mrf.mxu2 }
 0x176   : > { %v886_v52 = vadd.f32 %v885_v35, %v2663_v7  ;;  %v806_v36 = vpop.f32.mrf.mxu0 }
 0x177   : > { %v926_v37 = vpop.f32.mrf.mxu3  ;;  %v807_v43 = vadd.f32 %v806_v36, %v2655_v2 }
 0x178   : > { %v2678_v38 = vadd.f32 %v926_v37, %v886_v52 }
 0x179   : > { %v847_v53 = vpop.f32.mrf.mxu1 }
 0x17a   : > { %v2680_v39 = vadd.f32 %v847_v53, %v807_v43 }
 0x17d   : > { %v888_v41 = vpop.f32.mrf.mxu2 }
 0x17e   : > { %v889_v54 = vadd.f32 %v888_v41, %v2663_v7  ;;  %v809_v42 = vpop.f32.mrf.mxu0 }
 0x17f   : > { %v929_v44 = vpop.f32.mrf.mxu3  ;;  %v810_v45 = vadd.f32 %v809_v42, %v2655_v2 }
 0x180   : > { %v2684_v55 = vadd.f32 %v929_v44, %v889_v54 }
 0x181   : > { %v850_v62 = vpop.f32.mrf.mxu1 }
 0x182   : > { %v2686_v0 = vadd.f32 %v850_v62, %v810_v45 }
 0x185   : > { %v891_v57 = vpop.f32.mrf.mxu2 }
 0x186   : > { %v892_v46 = vadd.f32 %v891_v57, %v2663_v7  ;;  %v812_v56 = vpop.f32.mrf.mxu0 }
 0x187   : > { %v932_v6 = vpop.f32.mrf.mxu3  ;;  %v813_v18 = vadd.f32 %v812_v56, %v2655_v2 }
 0x188   : > { %v2690_v1 = vadd.f32 %v932_v6, %v892_v46 }
 0x189   : > { %v853_v16 = vpop.f32.mrf.mxu1 }
 0x18a   : > { %v2692_v3 = vadd.f32 %v853_v16, %v813_v18 }
 0x18d   : > { %v894_v58 = vpop.f32.mrf.mxu2 }
 0x18e   : > { %v895_v17 = vadd.f32 %v894_v58, %v2663_v7 }
 0x18f   : > { %v935_v47 = vpop.f32.mrf.mxu3 }
 0x190   : > { %v2695_v9 = vadd.f32 %v935_v47, %v895_v17 }
 0x194   : > { %v955_v2 = vpop.f32.mrf.mxu0 }
 0x19a   : > { %v975_v61 = vpop.f32.mrf.mxu1 }
 0x19b   : > { %v976_v19 = vadd.f32 %v975_v61, %v955_v2 }
 0x19d   : > { %v1259_v8 = vsel %vm1258_vm0, %v976_v19, -inf }
 0x1a2   : > { %v995_v4 = vpop.f32.mrf.mxu2 }
 0x1a4   : > { %v1035_v7 = vpop.f32.mrf.mxu0 }
 0x1a8   : > { %v1015_v59 = vpop.f32.mrf.mxu3 }
 0x1a9   : > { %v1016_v5 = vadd.f32 %v1015_v59, %v995_v4 }
 0x1aa   : > { %v1055_v13 = vpop.f32.mrf.mxu1 }
 0x1ab   : > { %v1262_v12 = vsel %vm1258_vm0, %v1016_v5, -inf  ;;  %v1056_v14 = vadd.f32 %v1055_v13, %v1035_v7 }
 0x1ac   : > { %1263 = vmax.xlane.f32.xlu0 %v1262_v12 }
 0x1ad   : > { %v1265_v20 = vsel %vm1258_vm0, %v1056_v14, -inf }
 0x1b2   : > { %v1075_v10 = vpop.f32.mrf.mxu2 }
 0x1b4   : > { %1260 = vmax.xlane.f32.xlu0 %v1259_v8  ;;  %v1115_v15 = vpop.f32.mrf.mxu0 }
 0x1b8   : > { %v1095_v11 = vpop.f32.mrf.mxu3 }
 0x1b9   : > { %v1096_v48 = vadd.f32 %v1095_v11, %v1075_v10 }
 0x1ba   : > { %v1135_v63 = vpop.f32.mrf.mxu1 }
 0x1bb   : > { %v1268_v60 = vsel %vm1258_vm0, %v1096_v48, -inf  ;;  %v1136_v27 = vadd.f32 %v1135_v63, %v1115_v15 }
 0x1bc   : > { %1269 = vmax.xlane.f32.xlu1 %v1268_v60 }
 0x1bd   : > { %v1271_v28 = vsel %vm1258_vm0, %v1136_v27, -inf }
 0x1c2   : > { %v1155_v49 = vpop.f32.mrf.mxu2 }
 0x1c4   : > { %1266 = vmax.xlane.f32.xlu1 %v1265_v20  ;;  %v1195_v26 = vpop.f32.mrf.mxu0 }
 0x1c8   : > { %v1175_v21 = vpop.f32.mrf.mxu3 }
 0x1c9   : > { %v1176_v22 = vadd.f32 %v1175_v21, %v1155_v49 }
 0x1ca   : > { %v1215_v23 = vpop.f32.mrf.mxu1 }
 0x1cb   : > { %v1216_v24 = vadd.f32 %v1215_v23, %v1195_v26  ;;  %v1274_v25 = vsel %vm1258_vm0, %v1176_v22, -inf }
 0x1cc   : > { %1275 = vmax.xlane.f32.xlu2 %v1274_v25 }
 0x1cd   : > { %v1277_v50 = vsel %vm1258_vm0, %v1216_v24, -inf }
 0x1ce   : > { %1278 = vmax.xlane.f32.xlu1 %v1277_v50 }
 0x1d2   : > { %v1235_v29 = vpop.f32.mrf.mxu2 }
 0x1d4   : > { %1272 = vmax.xlane.f32.xlu2 %v1271_v28 }
 0x1d8   : > { %v1255_v30 = vpop.f32.mrf.mxu3 }
 0x1d9   : > { %v1256_v51 = vadd.f32 %v1255_v30, %v1235_v29 }
 0x1db   : > { %v1280_v31 = vsel %vm1258_vm0, %v1256_v51, -inf }
 0x1dc   : > { %1281 = vmax.xlane.f32.xlu0 %v1280_v31 }
 0x21f   : > { %v1264_v32 = vpop.xlane.xlu0 %1263 }
 0x220   : > { %v1284_v40 = vsub.f32 %v1016_v5, %v1264_v32 }
 0x222   : > { %v1293_v33 = vmul.f32 1.442695, %v1284_v40 }
 0x224   : > { %2043 = vpow2.f32 %v1293_v33 }
 0x227   : > { %v1261_v35 = vpop.xlane.xlu0 %1260 }
 0x228   : > { %v1283_v52 = vsub.f32 %v976_v19, %v1261_v35 }
 0x22a   : > { %v2044_v36 = vpop.eup %2043  ;;  %v1291_v37 = vmul.f32 1.442695, %v1283_v52 }
 0x22b   : > { %v1310_v43 = vsel %vm1258_vm0, %v2044_v36, 0.0 }
 0x22c   : > { %2045 = vpow2.f32 %v1291_v37  ;;  %1311 = vadd.xlane.f32.xlu2 %v1310_v43 }
 0x22f   : > { %v1270_v53 = vpop.xlane.xlu1 %1269 }
 0x230   : > { %v1286_v41 = vsub.f32 %v1096_v48, %v1270_v53 }
 0x232   : > { %v2046_v54 = vpop.eup %2045  ;;  %v1297_v42 = vmul.f32 1.442695, %v1286_v41 }
 0x233   : > { %v1307_v44 = vsel %vm1258_vm0, %v2046_v54, 0.0 }
 0x234   : > { %2047 = vpow2.f32 %v1297_v42  ;;  %1308 = vadd.xlane.f32.xlu0 %v1307_v44 }
 0x237   : > { %v1267_v45 = vpop.xlane.xlu1 %1266 }
 0x238   : > { %v1285_v62 = vsub.f32 %v1056_v14, %v1267_v45 }
 0x23a   : > { %v2048_v57 = vpop.eup %2047  ;;  %v1295_v46 = vmul.f32 1.442695, %v1285_v62 }
 0x23b   : > { %v1316_v56 = vsel %vm1258_vm0, %v2048_v57, 0.0 }
 0x23c   : > { %2049 = vpow2.f32 %v1295_v46  ;;  %1317 = vadd.xlane.f32.xlu1 %v1316_v56 }
 0x23f   : > { %v1276_v6 = vpop.xlane.xlu2 %1275 }
 0x240   : > { %v1288_v18 = vsub.f32 %v1176_v22, %v1276_v6 }
 0x241   : > { %v1279_v16 = vpop.xlane.xlu1 %1278 }
 0x242   : > { %v2050_v58 = vpop.eup %2049  ;;  %v1301_v17 = vmul.f32 1.442695, %v1288_v18  ;;  %v1289_v47 = vsub.f32 %v1216_v24, %v1279_v16 }
 0x243   : > { %v1313_v4 = vsel %vm1258_vm0, %v2050_v58, 0.0 }
 0x244   : > { %2051 = vpow2.f32 %v1301_v17  ;;  %1314 = vadd.xlane.f32.xlu2 %v1313_v4  ;;  %v1303_v59 = vmul.f32 1.442695, %v1289_v47 }
 0x246   : > { %2053 = vpow2.f32 %v1303_v59 }
 0x247   : > { %v1273_v5 = vpop.xlane.xlu2 %1272 }
 0x248   : > { %v1287_v12 = vsub.f32 %v1136_v27, %v1273_v5 }
 0x24a   : > { %v2052_v61 = vpop.eup %2051  ;;  %v1299_v2 = vmul.f32 1.442695, %v1287_v12 }
 0x24b   : > { %v1322_v19 = vsel %vm1258_vm0, %v2052_v61, 0.0 }
 0x24c   : > { %2055 = vpow2.f32 %v1299_v2  ;;  %1323 = vadd.xlane.f32.xlu0 %v1322_v19  ;;  %v2054_v10 = vpop.eup %2053 }
 0x24d   : > { %v1325_v60 = vsel %vm1258_vm0, %v2054_v10, 0.0 }
 0x24f   : > { %v1282_v8 = vpop.xlane.xlu0 %1281 }
 0x250   : > { %v1290_v11 = vsub.f32 %v1256_v51, %v1282_v8 }
 0x252   : > { %v2056_v48 = vpop.eup %2055  ;;  %v1305_v7 = vmul.f32 1.442695, %v1290_v11 }
 0x253   : > { %v1319_v13 = vsel %vm1258_vm0, %v2056_v48, 0.0 }
 0x254   : > { %2057 = vpow2.f32 %v1305_v7  ;;  %1320 = vadd.xlane.f32.xlu1 %v1319_v13  ;;  %1326 = vadd.xlane.f32.xlu0 %v1325_v60 }
 0x25a   : > { %v2058_v14 = vpop.eup %2057 }
 0x25b   : > { %v1328_v15 = vsel %vm1258_vm0, %v2058_v14, 0.0 }
 0x25c   : > { %1329 = vadd.xlane.f32.xlu2 %v1328_v15 }
 0x29f   : > { %v1312_v63 = vpop.xlane.xlu2 %1311 }
 0x2a0   : > { %2059 = vrcp.f32 %v1312_v63 }
 0x2a6   : > { %v2060_v20 = vpop.eup %2059 }
 0x2a7   : > { %v1340_v49 = vmul.f32 %v2060_v20, %v2044_v36  ;;  %v1309_v21 = vpop.xlane.xlu0 %1308 }
 0x2a8   : > { %2061 = vrcp.f32 %v1309_v21 }
 0x2a9   : > { %1950 = vmatmul.msk.f32.vlgmr.msrb.gmra.mxu2 %vm1258_vm0, %v1340_v49  ;;  %1951 = vmatmul.msk.f32.vlgmr.msrb.gmra.mxu3 %vm1258_vm0, %v1340_v49 }
 0x2aa   : > { %1580 = vmatpush.msrb.mxu2 %v2680_v39  ;;  %1600 = vmatpush.msrb.mxu3 %v2684_v55 }
 0x2ae   : > { %v2062_v22 = vpop.eup %2061 }
 0x2af   : > { %v1339_v26 = vmul.f32 %v2062_v22, %v2046_v54  ;;  %v1318_v23 = vpop.xlane.xlu1 %1317 }
 0x2b0   : > { %2063 = vrcp.f32 %v1318_v23 }
 0x2b1   : > { %1948 = vmatmul.msk.f32.vlgmr.msrb.gmra.mxu0 %vm1258_vm0, %v1339_v26  ;;  %1949 = vmatmul.msk.f32.vlgmr.msrb.gmra.mxu1 %vm1258_vm0, %v1339_v26 }
 0x2b2   : > { %1537 = vmatpush.msrb.mxu0 %v2674_v34  ;;  %1557 = vmatpush.msrb.mxu1 %v2678_v38 }
 0x2b6   : > { %v2064_v24 = vpop.eup %2063 }
 0x2b7   : > { %v1342_v25 = vmul.f32 %v2064_v24, %v2048_v57  ;;  %v1315_v50 = vpop.xlane.xlu2 %1314 }
 0x2b8   : > { %2065 = vrcp.f32 %v1315_v50 }
 0x2b9   : > { %1954 = vmatmul.msk.f32.vlgmr.msra.gmra.mxu2 %vm1258_vm0, %v1342_v25  ;;  %1955 = vmatmul.msk.f32.vlgmr.msra.gmra.mxu3 %vm1258_vm0, %v1342_v25 }
 0x2ba   : > { %1666 = vmatpush.msra.mxu2 %v2692_v3  ;;  %1686 = vmatpush.msra.mxu3 %v2695_v9 }
 0x2be   : > { %v2066_v39 = vpop.eup %2065 }
 0x2bf   : > { %v1341_v55 = vmul.f32 %v2066_v39, %v2050_v58  ;;  %v1324_v27 = vpop.xlane.xlu0 %1323 }
 0x2c0   : > { %2067 = vrcp.f32 %v1324_v27 }
 0x2c1   : > { %1952 = vmatmul.msk.f32.vlgmr.msra.gmra.mxu0 %vm1258_vm0, %v1341_v55  ;;  %1953 = vmatmul.msk.f32.vlgmr.msra.gmra.mxu1 %vm1258_vm0, %v1341_v55 }
 0x2c2   : > { %1623 = vmatpush.msra.mxu0 %v2686_v0  ;;  %1643 = vmatpush.msra.mxu1 %v2690_v1 }
 0x2c6   : > { %v2068_v34 = vpop.eup %2067 }
 0x2c7   : > { %v1344_v38 = vmul.f32 %v2068_v34, %v2052_v61  ;;  %v1321_v28 = vpop.xlane.xlu1 %1320  ;;  %v1327_v3 = vpop.xlane.xlu0 %1326 }
 0x2c8   : > { %2069 = vrcp.f32 %v1321_v28 }
 0x2c9   : > { %1958 = vmatmul.msk.f32.vlgmr.msrb.gmra.mxu2 %vm1258_vm0, %v1344_v38  ;;  %1959 = vmatmul.msk.f32.vlgmr.msrb.gmra.mxu3 %vm1258_vm0, %v1344_v38  ;;  %2071 = vrcp.f32 %v1327_v3 }
 0x2ce   : > { %v2070_v9 = vpop.eup %2069 }
 0x2cf   : > { %v1343_v29 = vmul.f32 %v2070_v9, %v2056_v48  ;;  %v1330_v30 = vpop.xlane.xlu2 %1329  ;;  %v2072_v0 = vpop.eup %2071 }
 0x2d0   : > { %2073 = vrcp.f32 %v1330_v30  ;;  %v1345_v51 = vmul.f32 %v2072_v0, %v2054_v10 }
 0x2d1   : > { %1956 = vmatmul.msk.f32.vlgmr.msrb.gmra.mxu0 %vm1258_vm0, %v1343_v29  ;;  %1957 = vmatmul.msk.f32.vlgmr.msrb.gmra.mxu1 %vm1258_vm0, %v1343_v29 }
 0x2d6   : > { %v2074_v1 = vpop.eup %2073 }
 0x2d7   : > { %v1346_v31 = vmul.f32 %v2074_v1, %v2058_v14 }
 0x2d9   : > { %1960 = vmatmul.msk.f32.vlgmr.msra.gmra.mxu0 %vm1258_vm0, %v1345_v51  ;;  %1961 = vmatmul.msk.f32.vlgmr.msra.gmra.mxu1 %vm1258_vm0, %v1345_v51 }
 0x2da   : > { %1962 = vmatmul.msk.f32.vlgmr.msra.gmra.mxu2 %vm1258_vm0, %v1346_v31  ;;  %1963 = vmatmul.msk.f32.vlgmr.msra.gmra.mxu3 %vm1258_vm0, %v1346_v31 }
 0x32c   : > { %v1410_v32 = vpop.f32.mrf.mxu2  ;;  %v1430_v40 = vpop.f32.mrf.mxu3 }
 0x32d   : > { %v1703_v52 = vrot.slane %v1410_v32, 4  ;;  %v1709_v54 = vrot.slane %v1430_v40, 4 }
 0x32e   : > { %v1367_v33 = vpop.f32.mrf.mxu0  ;;  %v1387_v35 = vpop.f32.mrf.mxu1 }
 0x32f   : > { %v1704_v41 = vmax.f32 %v1410_v32, %v1703_v52  ;;  %v1691_v42 = vrot.slane %v1367_v33, 4  ;;  %v1697_v44 = vrot.slane %v1387_v35, 4  ;;  %v1710_v46 = vmax.f32 %v1430_v40, %v1709_v54 }
 0x331   : > { %v1705_v57 = vrot.slane %v1704_v41, 2  ;;  %v1692_v56 = vmax.f32 %v1367_v33, %v1691_v42  ;;  %v1698_v6 = vmax.f32 %v1387_v35, %v1697_v44  ;;  %v1711_v5 = vrot.slane %v1710_v46, 2 }
 0x333   : > { %v1706_v59 = vmax.f32 %v1704_v41, %v1705_v57  ;;  %v1693_v12 = vrot.slane %v1692_v56, 2  ;;  %v1699_v61 = vrot.slane %v1698_v6, 2  ;;  %v1712_v20 = vmax.f32 %v1710_v46, %v1711_v5 }
 0x335   : > { %v1694_v49 = vmax.f32 %v1692_v56, %v1693_v12  ;;  %v1707_v21 = vrot.slane %v1706_v59, 1  ;;  %v1700_v22 = vmax.f32 %v1698_v6, %v1699_v61  ;;  %v1713_v34 = vrot.slane %v1712_v20, 1 }
 0x337   : > { %v1695_v38 = vrot.slane %v1694_v49, 1  ;;  %v1708_v9 = vmax.f32 %v1706_v59, %v1707_v21  ;;  %v1701_v29 = vrot.slane %v1700_v22, 1 }
 0x339   : > { %v1702_v41 = vmax.f32 %v1700_v22, %v1701_v29 }
 0x33c   : > { %v1496_v36 = vpop.f32.mrf.mxu2  ;;  %v1516_v37 = vpop.f32.mrf.mxu3 }
 0x33d   : > { %v1727_v18 = vrot.slane %v1496_v36, 4  ;;  %v1733_v16 = vrot.slane %v1516_v37, 4 }
 0x33e   : > { %v1453_v43 = vpop.f32.mrf.mxu0  ;;  %v1473_v53 = vpop.f32.mrf.mxu1 }
 0x33f   : > { %v1715_v45 = vrot.slane %v1453_v43, 4  ;;  %v1721_v62 = vrot.slane %v1473_v53, 4  ;;  %v1728_v8 = vmax.f32 %v1496_v36, %v1727_v18  ;;  %v1734_v10 = vmax.f32 %v1516_v37, %v1733_v16 }
 0x340   : > { %v1714_v36 = vmax.f32 %v1712_v20, %v1713_v34  ;;  %v1696_v37 = vmax.f32 %v1694_v49, %v1695_v38 }
 0x341   : > { %v1716_v58 = vmax.f32 %v1453_v43, %v1715_v45  ;;  %v1722_v17 = vmax.f32 %v1473_v53, %v1721_v62  ;;  %v1729_v26 = vrot.slane %v1728_v8, 2  ;;  %v1735_v23 = vrot.slane %v1734_v10, 2 }
 0x342   : > { %v1804_v5 = vsel %vm1803_vm1, %v1708_v9, %v1696_v37  ;;  %v1817_v12 = vsel %vm1803_vm1, %v1714_v36, %v1702_v41 }
 0x343   : > { %v1717_v7 = vrot.slane %v1716_v58, 2  ;;  %v1723_v13 = vrot.slane %v1722_v17, 2  ;;  %v1730_v30 = vmax.f32 %v1728_v8, %v1729_v26  ;;  %v1736_v0 = vmax.f32 %v1734_v10, %v1735_v23 }
 0x345   : > { %v1718_v24 = vmax.f32 %v1716_v58, %v1717_v7  ;;  %v1724_v25 = vmax.f32 %v1722_v17, %v1723_v13  ;;  %v1731_v54 = vrot.slane %v1730_v30, 1  ;;  %v1737_v42 = vrot.slane %v1736_v0, 1 }
 0x347   : > { %v1719_v1 = vrot.slane %v1718_v24, 1  ;;  %v1725_v51 = vrot.slane %v1724_v25, 1  ;;  %v1732_v61 = vmax.f32 %v1730_v30, %v1731_v54 }
 0x349   : > { %v1720_v44 = vmax.f32 %v1718_v24, %v1719_v1  ;;  %v1726_v45 = vmax.f32 %v1724_v25, %v1725_v51 }
 0x34b   : > { %v1818_v8 = vsel %vm1805_vm2, %v1726_v45, %v1817_v12 }
 0x34c   : > { %v1582_v47 = vpop.f32.mrf.mxu2  ;;  %v1602_v4 = vpop.f32.mrf.mxu3 }
 0x34d   : > { %v1751_v60 = vrot.slane %v1582_v47, 4  ;;  %v1757_v14 = vrot.slane %v1602_v4, 4 }
 0x34e   : > { %v1539_v2 = vpop.f32.mrf.mxu0  ;;  %v1559_v19 = vpop.f32.mrf.mxu1 }
 0x34f   : > { %v1739_v11 = vrot.slane %v1539_v2, 4  ;;  %v1745_v48 = vrot.slane %v1559_v19, 4  ;;  %v1752_v50 = vmax.f32 %v1582_v47, %v1751_v60  ;;  %v1758_v39 = vmax.f32 %v1602_v4, %v1757_v14 }
 0x351   : > { %v1740_v15 = vmax.f32 %v1539_v2, %v1739_v11  ;;  %v1746_v63 = vmax.f32 %v1559_v19, %v1745_v48  ;;  %v1753_v40 = vrot.slane %v1752_v50, 2  ;;  %v1759_v33 = vrot.slane %v1758_v39, 2 }
 0x352   : > { %v1738_v2 = vmax.f32 %v1736_v0, %v1737_v42  ;;  %v1806_v19 = vsel %vm1805_vm2, %v1720_v44, %v1804_v5 }
 0x353   : > { %v1741_v55 = vrot.slane %v1740_v15, 2  ;;  %v1747_v27 = vrot.slane %v1746_v63, 2  ;;  %v1754_v46 = vmax.f32 %v1752_v50, %v1753_v40  ;;  %v1760_v56 = vmax.f32 %v1758_v39, %v1759_v33 }
 0x354   : > { %v1808_v49 = vsel %vm1807_vm3, %v1732_v61, %v1806_v19  ;;  %v1819_v21 = vsel %vm1807_vm3, %v1738_v2, %v1818_v8 }
 0x355   : > { %v1742_v35 = vmax.f32 %v1740_v15, %v1741_v55  ;;  %v1748_v52 = vmax.f32 %v1746_v63, %v1747_v27  ;;  %v1755_v14 = vrot.slane %v1754_v46, 1  ;;  %v1761_v15 = vrot.slane %v1760_v56, 1 }
 0x356   : > { %v1625_v28 = vpop.f32.mrf.mxu0  ;;  %v1645_v3 = vpop.f32.mrf.mxu1 }
 0x357   : > { %v1763_v31 = vrot.slane %v1625_v28, 4  ;;  %v1769_v32 = vrot.slane %v1645_v3, 4  ;;  %v1743_v6 = vrot.slane %v1742_v35, 1  ;;  %v1749_v18 = vrot.slane %v1748_v52, 1 }
 0x358   : > { %v1756_v39 = vmax.f32 %v1754_v46, %v1755_v14  ;;  %v1762_v55 = vmax.f32 %v1760_v56, %v1761_v15 }
 0x359   : > { %v1764_v43 = vmax.f32 %v1625_v28, %v1763_v31  ;;  %v1770_v53 = vmax.f32 %v1645_v3, %v1769_v32  ;;  %v1744_v48 = vmax.f32 %v1742_v35, %v1743_v6  ;;  %v1750_v7 = vmax.f32 %v1748_v52, %v1749_v18 }
 0x35b   : > { %v1765_v62 = vrot.slane %v1764_v43, 2  ;;  %v1771_v57 = vrot.slane %v1770_v53, 2  ;;  %v1810_v23 = vsel %vm1809_vm4, %v1744_v48, %v1808_v49  ;;  %v1820_v24 = vsel %vm1809_vm4, %v1750_v7, %v1819_v21 }
 0x35c   : > { %v1812_v38 = vsel %vm1811_vm5, %v1756_v39, %v1810_v23  ;;  %v1821_v28 = vsel %vm1811_vm5, %v1762_v55, %v1820_v24 }
 0x35d   : > { %v1668_v16 = vpop.f32.mrf.mxu2  ;;  %v1688_v58 = vpop.f32.mrf.mxu3  ;;  %v1766_v17 = vmax.f32 %v1764_v43, %v1765_v62  ;;  %v1772_v47 = vmax.f32 %v1770_v53, %v1771_v57 }
 0x35e   : > { %v1775_v4 = vrot.slane %v1668_v16, 4  ;;  %v1781_v59 = vrot.slane %v1688_v58, 4 }
 0x35f   : > { %v1767_v13 = vrot.slane %v1766_v17, 1  ;;  %v1773_v60 = vrot.slane %v1772_v47, 1 }
 0x360   : > { %v1776_v10 = vmax.f32 %v1668_v16, %v1775_v4  ;;  %v1782_v11 = vmax.f32 %v1688_v58, %v1781_v59 }
 0x361   : > { %v1768_v25 = vmax.f32 %v1766_v17, %v1767_v13  ;;  %v1774_v50 = vmax.f32 %v1772_v47, %v1773_v60 }
 0x362   : > { %v1777_v63 = vrot.slane %v1776_v10, 2  ;;  %v1783_v20 = vrot.slane %v1782_v11, 2 }
 0x363   : > { %v1814_v29 = vsel %vm1813_vm6, %v1768_v25, %v1812_v38  ;;  %v1822_v30 = vsel %vm1813_vm6, %v1774_v50, %v1821_v28 }
 0x364   : > { %v1778_v22 = vmax.f32 %v1776_v10, %v1777_v63  ;;  %v1784_v26 = vmax.f32 %v1782_v11, %v1783_v20 }
 0x366   : > { %v1779_v27 = vrot.slane %v1778_v22, 1  ;;  %v1785_v34 = vrot.slane %v1784_v26, 1 }
 0x368   : > { %v1780_v3 = vmax.f32 %v1778_v22, %v1779_v27  ;;  %v1786_v9 = vmax.f32 %v1784_v26, %v1785_v34 }
 0x36a   : > { %v1816_v0 = vsel %vm1815_vm7, %v1780_v3, %v1814_v29  ;;  %v1823_v1 = vsel %vm1815_vm7, %v1786_v9, %v1822_v30 }
 0x36b   : > { %1826 = vst [vmem:[%s222_s16] sm:$0xff] %v1816_v0 }
 0x36c   : > { %1827 = vst [vmem:[%s222_s16 + $0x8] sm:$0xff] %v1823_v1 }
 0x36d   : > { %2192 = shalt.err (!%p2189_p10)
}
 0x36e   : > { %1982 = dma.vmem_to_hbm [thread:$0]  (%p2329_p3), %s1843_s29, 256, %s1845_s4, %s1829_s5  }
 0x36f PF: > { %s1856_s22 = sand.u32 1, %s2223_s12   ;;  %p2792_p12 = scmp.ge.s32.totalorder %s2235_s15, 2 }
 0x370   : > { %s1857_s25 = scalar_lea.sflag [#allocation4], %s1856_s22 }
 0x371   : > { %p1996_p13 = pnand %p2792_p12, %p2298_p6 }
 0x373   : > { %p1997_p0 = pneg %p1996_p13 }
 0x375   : > { %2218 = dma.done.wait (%p1997_p0), %s1857_s25, 256  }
 0x376   : > { %2220 = vsyncadd (%p1997_p0), %s1857_s25, 4294967040  ;;  %p17_p5 = scmp.ge.s32.totalorder %s2319_s6, 4   ;;  %s2793_s12 = smov %s2227_s13 }
 0x377   : > { %s2794_s13 = smov %s2231_s14  ;;  %s2795_s14 = smov %s2335_s10 }
 0x378   : > { %s2796_s15 = smov %s2319_s6  ;;  %19 = sbr.rel (!%p17_p5) target bundleno = 6 (0x6), region = 85 }
 0x37d   :  { %1863 = vsyncpa [#allocation3], 1 }
 0x37e   :  { %1865 = vsyncpa [#allocation3 + $0x1], 1 }
 0x37f   :  { %1866 = vsyncpa [#allocation6], 1 }
 0x380   :  { %1867 = vsyncpa [#allocation4], 1 }
 0x381   :  { %1869 = vsyncpa [#allocation4 + $0x1], 1 }

</bundles_post_ra>
